<compile_context>
chip_gen: v7x
topology: tpu7x:2x2x1
jax: 0.10.0
libtpu: 0.0.40
codegen_flags: <defaults>
</compile_context>

<pallas_src>
import functools

import jax
import jax.numpy as jnp
from jax.experimental import pallas as pl
from jax.experimental.pallas import tpu as pltpu


def _round_up(a: int, b: int) -> int:
    return (a + b - 1) // b * b


def ffn_kernel(x_ref, w1_ref, b1_ref, w2_ref, b2_ref, o_ref, acc_ref):
    # x_ref:  (tm, C)  bf16    w1_ref: (C, th) bf16    b1_ref: (1, th) f32
    # w2_ref: (th, C)  bf16    b2_ref: (1, C)  f32
    # o_ref:  (tm, C)  x.dtype acc_ref: (tm, C) f32 scratch
    j = pl.program_id(1)

    @pl.when(j == 0)
    def _():
        acc_ref[...] = jnp.zeros_like(acc_ref)

    # First linear: bf16 MXU matmul, f32 accumulation; bias + ReLU in f32.
    h = jnp.dot(x_ref[...], w1_ref[...], preferred_element_type=jnp.float32)
    h = jnp.maximum(h + b1_ref[...], 0.0)

    # Second linear, accumulated over hidden-dim tiles.
    acc_ref[...] += jnp.dot(h.astype(w2_ref.dtype), w2_ref[...],
                            preferred_element_type=jnp.float32)

    @pl.when(j == pl.num_programs(1) - 1)
    def _():
        o_ref[...] = (acc_ref[...] + b2_ref[...]).astype(o_ref.dtype)


@functools.partial(jax.jit, static_argnames=("tm", "th"))
def feed_forward(x, w1, b1, w2, b2, *, tm=256, th=512):
    """x: (..., C).  Returns same shape/dtype as x."""
    orig_shape = x.shape
    out_dtype = x.dtype
    out_itemsize = jnp.dtype(out_dtype).itemsize
    C = orig_shape[-1]
    H = w1.shape[1]

    x2d = x.reshape(-1, C)
    M = x2d.shape[0]

    # Clamp tile sizes for small inputs, pad for non-divisible ones.
    tm_eff = min(tm, _round_up(M, 8))
    th_eff = min(th, _round_up(H, 128))
    M_pad = _round_up(M, tm_eff)
    H_pad = _round_up(H, th_eff)

    # bf16 operands for the MXU; f32 biases for the VPU epilogue.
    xb = x2d.astype(jnp.bfloat16)
    w1b = w1.astype(jnp.bfloat16)
    w2b = w2.astype(jnp.bfloat16)
    b1f = b1.astype(jnp.float32).reshape(1, H)
    b2f = b2.astype(jnp.float32).reshape(1, C)

    if M_pad != M:
        xb = jnp.pad(xb, ((0, M_pad - M), (0, 0)))
    if H_pad != H:
        # Zero-padding the hidden dim is exact: ReLU(0 + 0) @ 0 contributes 0.
        w1b = jnp.pad(w1b, ((0, 0), (0, H_pad - H)))
        b1f = jnp.pad(b1f, ((0, 0), (0, H_pad - H)))
        w2b = jnp.pad(w2b, ((0, H_pad - H), (0, 0)))

    grid_m = M_pad // tm_eff
    grid_h = H_pad // th_eff

    # Explicit VMEM budget (double-buffered tiles + scratch + hidden temp),
    # with 2x headroom, so the same kernel fits v7x (64 MiB) and v5e/v6e.
    vmem_est = (
        2 * tm_eff * C * 2          # x tiles (bf16)
        + 2 * C * th_eff * 2        # W1 tiles (bf16)
        + 2 * th_eff * C * 2        # W2 tiles (bf16)
        + 2 * (th_eff + C) * 4      # bias tiles (f32)
        + 2 * tm_eff * C * out_itemsize  # output tiles
        + tm_eff * C * 4            # f32 accumulator scratch
        + tm_eff * th_eff * 4       # f32 hidden intermediate
    )
    vmem_limit = int(max(16 * 1024 * 1024, 2 * vmem_est))

    flops = 2 * M_pad * C * H_pad * 2  # two matmuls
    bytes_accessed = (
        M_pad * C * 2 + C * H_pad * 2 + H_pad * C * 2
        + (H_pad + C) * 4 + M_pad * C * out_itemsize)

    out2d = pl.pallas_call(
        ffn_kernel,
        out_shape=jax.ShapeDtypeStruct((M_pad, C), out_dtype),
        grid_spec=pltpu.PrefetchScalarGridSpec(
            num_scalar_prefetch=0,
            grid=(grid_m, grid_h),
            in_specs=[
                pl.BlockSpec((tm_eff, C), lambda i, j: (i, 0)),   # x rows
                pl.BlockSpec((C, th_eff), lambda i, j: (0, j)),   # W1 hidden tile
                pl.BlockSpec((1, th_eff), lambda i, j: (0, j)),   # b1 hidden tile
                pl.BlockSpec((th_eff, C), lambda i, j: (j, 0)),   # W2 hidden tile
                pl.BlockSpec((1, C), lambda i, j: (0, 0)),        # b2
            ],
            out_specs=pl.BlockSpec((tm_eff, C), lambda i, j: (i, 0)),
            scratch_shapes=[pltpu.VMEM((tm_eff, C), jnp.float32)],
        ),
        compiler_params=pltpu.CompilerParams(
            dimension_semantics=("parallel", "arbitrary"),
            vmem_limit_bytes=vmem_limit,
        ),
        cost_estimate=pl.CostEstimate(
            flops=int(flops),
            transcendentals=0,
            bytes_accessed=int(bytes_accessed),
        ),
    )(xb, w1b, b1f, w2b, b2f)

    return out2d[:M].reshape(orig_shape)


def init_params(key, n_embd, dtype=jnp.float32):
    """Deterministic init matching PyTorch nn.Linear default (uniform ±1/sqrt(fan_in))."""
    hidden = 4 * n_embd
    k1, k2, k3, k4 = jax.random.split(key, 4)
    lim1 = 1.0 / jnp.sqrt(n_embd)
    lim2 = 1.0 / jnp.sqrt(hidden)
    w1 = jax.random.uniform(k1, (n_embd, hidden), dtype, -lim1, lim1)   # stored (in, out)
    b1 = jax.random.uniform(k2, (hidden,), dtype, -lim1, lim1)
    w2 = jax.random.uniform(k3, (hidden, n_embd), dtype, -lim2, lim2)
    b2 = jax.random.uniform(k4, (n_embd,), dtype, -lim2, lim2)
    return w1, b1, w2, b2


if __name__ == "__main__":
    # Small shapes consistent with the module: batch=2, seq=8, n_embd=384.
    B, T, C = 2, 8, 384
    key = jax.random.PRNGKey(0)
    kx, kp = jax.random.split(key)
    x = jax.random.normal(kx, (B, T, C), dtype=jnp.float32)
    w1, b1, w2, b2 = init_params(kp, C)

    out = feed_forward(x, w1, b1, w2, b2)
    out = jax.block_until_ready(out)

    # Reference in plain JAX with the same bf16 operand quantization
    # (dropout in eval mode == identity), f32 accumulation.
    q = lambda a: a.astype(jnp.bfloat16).astype(jnp.float32)
    h_ref = jnp.maximum(q(x) @ q(w1) + b1, 0.0)
    ref = q(h_ref) @ q(w2) + b2

    assert out.shape == x.shape
    assert jnp.allclose(out, ref, atol=2e-3, rtol=2e-3), "mismatch vs reference"

    print("KERNEL_OK")
</pallas_src>

<mosaic_0001>
module attributes {stable_mosaic.version = 11 : i64} {
  func.func @ffn_kernel(%arg0: i32, %arg1: i32, %arg2: memref<16x384xbf16, #tpu.memory_space<vmem>>, %arg3: memref<384x512xbf16, #tpu.memory_space<vmem>>, %arg4: memref<1x512xf32, #tpu.memory_space<vmem>>, %arg5: memref<512x384xbf16, #tpu.memory_space<vmem>>, %arg6: memref<1x384xf32, #tpu.memory_space<vmem>>, %arg7: memref<16x384xf32, #tpu.memory_space<vmem>>, %arg8: memref<16x384xf32, #tpu.memory_space<vmem>>) attributes {dimension_semantics = [#tpu.dimension_semantics<parallel>, #tpu.dimension_semantics<arbitrary>], iteration_bounds = array<i64: 1, 3>, scalar_prefetch = 0 : i64, scratch_operands = 1 : i64, tpu.core_type = #tpu.core_type<tc>, window_params = [{transform_indices = @transform_0, window_bounds = array<i64: 16, 384>}, {transform_indices = @transform_1, window_bounds = array<i64: 384, 512>}, {transform_indices = @transform_2, window_bounds = array<i64: 1, 512>}, {transform_indices = @transform_3, window_bounds = array<i64: 512, 384>}, {pipeline_mode = #tpu.pipeline_mode<synchronous>, transform_indices = @transform_4, window_bounds = array<i64: 1, 384>}, {transform_indices = @transform_5, window_bounds = array<i64: 16, 384>}]} {
    %c0_i32 = arith.constant 0 : i32
    %0 = arith.cmpi eq, %arg1, %c0_i32 : i32
    %1 = arith.extui %0 : i1 to i32
    %c0_i32_0 = arith.constant 0 : i32
    %2 = arith.cmpi ne, %1, %c0_i32_0 : i32
    scf.if %2 {
      %cst_15 = arith.constant 0.000000e+00 : f32
      %20 = vector.broadcast %cst_15 : f32 to vector<16x384xf32>
      %c0_16 = arith.constant 0 : index
      %c0_17 = arith.constant 0 : index
      %21 = vector.load %arg8[%c0_16, %c0_17] : memref<16x384xf32, #tpu.memory_space<vmem>>, vector<16x384xf32>
      tpu.vector_store %arg8[%c0_16, %c0_17], %20 {strides = array<i32>} : memref<16x384xf32, #tpu.memory_space<vmem>>, vector<16x384xf32>,
    } else {
    }
    %c0 = arith.constant 0 : index
    %c0_1 = arith.constant 0 : index
    %3 = vector.load %arg2[%c0, %c0_1] : memref<16x384xbf16, #tpu.memory_space<vmem>>, vector<16x384xbf16>
    %c0_2 = arith.constant 0 : index
    %c0_3 = arith.constant 0 : index
    %4 = vector.load %arg3[%c0_2, %c0_3] : memref<384x512xbf16, #tpu.memory_space<vmem>>, vector<384x512xbf16>
    %cst = arith.constant dense<0.000000e+00> : vector<16x512xf32>
    %5 = tpu.matmul %3, %4, %cst {dimension_numbers = #tpu.dot_dimension_numbers<[1], [0], [0], [1], [0, 0, 1, 1], [], []>} : vector<16x384xbf16>, vector<384x512xbf16>, vector<16x512xf32> -> vector<16x512xf32>
    %c0_4 = arith.constant 0 : index
    %c0_5 = arith.constant 0 : index
    %6 = vector.load %arg4[%c0_4, %c0_5] : memref<1x512xf32, #tpu.memory_space<vmem>>, vector<1x512xf32>
    %7 = vector.broadcast %6 : vector<1x512xf32> to vector<16x512xf32>
    %8 = arith.addf %5, %7 : vector<16x512xf32>
    %cst_6 = arith.constant 0.000000e+00 : f32
    %9 = vector.broadcast %cst_6 : f32 to vector<16x512xf32>
    %10 = arith.maximumf %8, %9 : vector<16x512xf32>
    %c0_7 = arith.constant 0 : index
    %c0_8 = arith.constant 0 : index
    %11 = vector.load %arg8[%c0_7, %c0_8] : memref<16x384xf32, #tpu.memory_space<vmem>>, vector<16x384xf32>
    %12 = arith.truncf %10 : vector<16x512xf32> to vector<16x512xbf16>
    %c0_9 = arith.constant 0 : index
    %c0_10 = arith.constant 0 : index
    %13 = vector.load %arg5[%c0_9, %c0_10] : memref<512x384xbf16, #tpu.memory_space<vmem>>, vector<512x384xbf16>
    %cst_11 = arith.constant dense<0.000000e+00> : vector<16x384xf32>
    %14 = tpu.matmul %12, %13, %cst_11 {dimension_numbers = #tpu.dot_dimension_numbers<[1], [0], [0], [1], [0, 0, 1, 1], [], []>} : vector<16x512xbf16>, vector<512x384xbf16>, vector<16x384xf32> -> vector<16x384xf32>
    %15 = arith.addf %11, %14 : vector<16x384xf32>
    %c0_12 = arith.constant 0 : index
    %c0_13 = arith.constant 0 : index
    %16 = vector.load %arg8[%c0_12, %c0_13] : memref<16x384xf32, #tpu.memory_space<vmem>>, vector<16x384xf32>
    tpu.vector_store %arg8[%c0_12, %c0_13], %15 {strides = array<i32>} : memref<16x384xf32, #tpu.memory_space<vmem>>, vector<16x384xf32>,
    %c2_i32 = arith.constant 2 : i32
    %17 = arith.cmpi eq, %arg1, %c2_i32 : i32
    %18 = arith.extui %17 : i1 to i32
    %c0_i32_14 = arith.constant 0 : i32
    %19 = arith.cmpi ne, %18, %c0_i32_14 : i32
    scf.if %19 {
      %c0_15 = arith.constant 0 : index
      %c0_16 = arith.constant 0 : index
      %20 = vector.load %arg8[%c0_15, %c0_16] : memref<16x384xf32, #tpu.memory_space<vmem>>, vector<16x384xf32>
      %c0_17 = arith.constant 0 : index
      %c0_18 = arith.constant 0 : index
      %21 = vector.load %arg6[%c0_17, %c0_18] : memref<1x384xf32, #tpu.memory_space<vmem>>, vector<1x384xf32>
      %22 = vector.broadcast %21 : vector<1x384xf32> to vector<16x384xf32>
      %23 = arith.addf %20, %22 : vector<16x384xf32>
      %c0_19 = arith.constant 0 : index
      %c0_20 = arith.constant 0 : index
      %24 = vector.load %arg7[%c0_19, %c0_20] : memref<16x384xf32, #tpu.memory_space<vmem>>, vector<16x384xf32>
      tpu.vector_store %arg7[%c0_19, %c0_20], %23 {strides = array<i32>} : memref<16x384xf32, #tpu.memory_space<vmem>>, vector<16x384xf32>,
    } else {
    }
    return
  }
  func.func @transform_0(%arg0: i32, %arg1: i32) -> (i32, i32) {
    %c0_i32 = arith.constant 0 : i32
    %c0_i32_0 = arith.constant 0 : i32
    return %arg0, %c0_i32 : i32, i32
  }
  func.func @transform_1(%arg0: i32, %arg1: i32) -> (i32, i32) {
    %c0_i32 = arith.constant 0 : i32
    %c0_i32_0 = arith.constant 0 : i32
    return %c0_i32, %arg1 : i32, i32
  }
  func.func @transform_2(%arg0: i32, %arg1: i32) -> (i32, i32) {
    %c0_i32 = arith.constant 0 : i32
    %c0_i32_0 = arith.constant 0 : i32
    return %c0_i32, %arg1 : i32, i32
  }
  func.func @transform_3(%arg0: i32, %arg1: i32) -> (i32, i32) {
    %c0_i32 = arith.constant 0 : i32
    %c0_i32_0 = arith.constant 0 : i32
    return %arg1, %c0_i32 : i32, i32
  }
  func.func @transform_4(%arg0: i32, %arg1: i32) -> (i32, i32) {
    %c0_i32 = arith.constant 0 : i32
    %c0_i32_0 = arith.constant 0 : i32
    %c0_i32_1 = arith.constant 0 : i32
    return %c0_i32, %c0_i32_0 : i32, i32
  }
  func.func @transform_5(%arg0: i32, %arg1: i32) -> (i32, i32) {
    %c0_i32 = arith.constant 0 : i32
    %c0_i32_0 = arith.constant 0 : i32
    return %arg0, %c0_i32 : i32, i32
  }
}

</mosaic_0001>

<bundles_post_ra>
// kernel: feed_forward.1
= control target key start
LH: loop header
LB: loop body
LE: loop exit
PB: predicated region body
PF: predicated region fallthrough
CT: control target
= control target key end

     0   :  { %10 = vsyncpa [#allocation5], 0  ;;  %s3003_s18 = smov 0   ;;  %s3005_s19 = smov 0   ;;  %s3545_s0 = inlined_call_operand.vmem [shape: bf16[16,384], index: 0, kind: input, shape index: {}]   ;;  %s3546_s1 = inlined_call_operand.vmem [shape: bf16[384,1536], index: 1, kind: input, shape index: {}]   ;;  %s3547_s2 = inlined_call_operand.vmem [shape: f32[1,1536], index: 2, kind: input, shape index: {}]   ;;  %s3548_s3 = inlined_call_operand.vmem [shape: bf16[1536,384], index: 3, kind: input, shape index: {}]   ;;  %s3549_s4 = inlined_call_operand.vmem [shape: f32[1,384], index: 4, kind: input, shape index: {}]   ;;  %s3550_s5 = inlined_call_operand.hbm [shape: f32[16,384], index: 5, kind: output, shape index: {}]  }
   0x1   :  { %s3007_s20 = smov 0   ;;  %s3009_s21 = smov 0  }
   0x2   :  { %s3011_s22 = smov 0  }
   0x3 LB: > { %s2292_s23 = sadd.s32 4294967295, %s2966_s22   ;;  %s25_s24 = sadd.s32 1, %s2962_s21  ;;  %s2966_s22 = sphi %s3011_s22, %s16_s22   ;;  %s2962_s21 = sphi %s3009_s21, %s3555_s21   ;;  %s2958_s20 = sphi %s3007_s20, %s3554_s20   ;;  %s2954_s19 = sphi %s3005_s19, %s3553_s19   ;;  %s2950_s18 = sphi %s3003_s18, %s3552_s18  }
   0x4   : > { %p26_p0 = scmp.ge.s32.totalorder %s25_s24, 3  ;;  %p68_p1 = scmp.ne.s32.totalorder %s2954_s19, %s2950_s18 }
   0x5   : > { %p69_p2 = scmp.eq.s32.totalorder %s2966_s22, 0  ;;  %s61_s26 = sadd.s32 1, %s2954_s19 }
   0x6   : > { %s3557_s24 = smov (%p26_p0, %s25_s24), 0  ;;  %p2295_p5 = scmp.ge.s32.totalorder %s2966_s22, 3 }
   0x7   : > { %p70_p3 = por %p69_p2, %p68_p1  ;;  %s58_s25 = ssub.s32 %s2962_s21, %s3557_s24 }
   0x8   : > { %p59_p4 = scmp.eq.s32.totalorder %s58_s25, 0  ;;  %206 = sbr.rel (%p2295_p5) target bundleno = 68 (0x44), region = 24 }
   0xa   : > { %s3039_s27 = scalar_select %p59_p4, %s2954_s19, %s61_s26  }
   0xf   : > { %209 = sbr.rel (!%p70_p3) target bundleno = 68 (0x44), region = 28  ;;  %s211_s28 = sand.u32 (%p70_p3), 1, %s2954_s19  }
  0x10   : > { %s2503_s29 = sshll.u32 (%p70_p3), %s2962_s21, 4  ;;  %s2568_s30 = smul.u32 (%p70_p3), 768, %s211_s28 }
  0x11   : > { %s3047_s8 = scalar_lea.vmem (%p70_p3), %s3546_s1, %s2503_s29 }
  0x12   : > { %v229_v0 = vld [vmem:[%s3047_s8] sm:$0xff] (%p70_p3)  ;;  %v231_v1 = vld [vmem:[%s3047_s8 + $0x8] sm:$0xff] (%p70_p3)  ;;  %v233_v2 = vld [vmem:[%s3047_s8 + $0x30] sm:$0xff] (%p70_p3)  ;;  %s3055_s9 = scalar_lea.vmem (%p70_p3), [#allocation3], %s2568_s30 }
  0x13   : > { %v235_v3 = vld [vmem:[%s3047_s8 + $0x38] sm:$0xff] (%p70_p3)  ;;  %v237_v4 = vld [vmem:[%s3047_s8 + $0x60] sm:$0xff] (%p70_p3)  ;;  %v239_v5 = vld [vmem:[%s3047_s8 + $0x68] sm:$0xff] (%p70_p3)  ;;  %230 = vst [vmem:[%s3055_s9] sm:$0xff] (%p70_p3), %v229_v0 }
  0x14   : > { %232 = vst [vmem:[%s3055_s9 + $0x8] sm:$0xff] (%p70_p3), %v231_v1  ;;  %234 = vst [vmem:[%s3055_s9 + $0x10] sm:$0xff] (%p70_p3), %v233_v2  ;;  %v241_v6 = vld [vmem:[%s3047_s8 + $0x90] sm:$0xff] (%p70_p3)  ;;  %v243_v7 = vld [vmem:[%s3047_s8 + $0x98] sm:$0xff] (%p70_p3) }
  0x15   : > { %236 = vst [vmem:[%s3055_s9 + $0x18] sm:$0xff] (%p70_p3), %v235_v3  ;;  %238 = vst [vmem:[%s3055_s9 + $0x20] sm:$0xff] (%p70_p3), %v237_v4  ;;  %v245_v8 = vld [vmem:[%s3047_s8 + $0xc0] sm:$0xff] (%p70_p3)  ;;  %v247_v9 = vld [vmem:[%s3047_s8 + $0xc8] sm:$0xff] (%p70_p3) }
  0x16   : > { %240 = vst [vmem:[%s3055_s9 + $0x28] sm:$0xff] %v239_v5  ;;  %242 = vst [vmem:[%s3055_s9 + $0x30] sm:$0xff] %v241_v6  ;;  %v249_v10 = vld [vmem:[%s3047_s8 + $0xf0] sm:$0xff]  ;;  %v251_v11 = vld [vmem:[%s3047_s8 + $0xf8] sm:$0xff] }
  0x17   : > { %244 = vst [vmem:[%s3055_s9 + $0x38] sm:$0xff] %v243_v7  ;;  %246 = vst [vmem:[%s3055_s9 + $0x40] sm:$0xff] %v245_v8  ;;  %v253_v12 = vld [vmem:[%s3047_s8 + $0x120] sm:$0xff]  ;;  %v255_v13 = vld [vmem:[%s3047_s8 + $0x128] sm:$0xff] }
  0x18   : > { %248 = vst [vmem:[%s3055_s9 + $0x48] sm:$0xff] %v247_v9  ;;  %250 = vst [vmem:[%s3055_s9 + $0x50] sm:$0xff] %v249_v10  ;;  %v257_v14 = vld [vmem:[%s3047_s8 + $0x150] sm:$0xff]  ;;  %v259_v15 = vld [vmem:[%s3047_s8 + $0x158] sm:$0xff] }
  0x19   : > { %252 = vst [vmem:[%s3055_s9 + $0x58] sm:$0xff] %v251_v11  ;;  %254 = vst [vmem:[%s3055_s9 + $0x60] sm:$0xff] %v253_v12  ;;  %v261_v16 = vld [vmem:[%s3047_s8 + $0x180] sm:$0xff]  ;;  %v263_v17 = vld [vmem:[%s3047_s8 + $0x188] sm:$0xff] }
  0x1a   : > { %256 = vst [vmem:[%s3055_s9 + $0x68] sm:$0xff] %v255_v13  ;;  %258 = vst [vmem:[%s3055_s9 + $0x70] sm:$0xff] %v257_v14  ;;  %v265_v18 = vld [vmem:[%s3047_s8 + $0x1b0] sm:$0xff]  ;;  %v267_v19 = vld [vmem:[%s3047_s8 + $0x1b8] sm:$0xff] }
  0x1b   : > { %260 = vst [vmem:[%s3055_s9 + $0x78] sm:$0xff] %v259_v15  ;;  %262 = vst [vmem:[%s3055_s9 + $0x80] sm:$0xff] %v261_v16  ;;  %v269_v20 = vld [vmem:[%s3047_s8 + $0x1e0] sm:$0xff]  ;;  %v271_v21 = vld [vmem:[%s3047_s8 + $0x1e8] sm:$0xff] }
  0x1c   : > { %264 = vst [vmem:[%s3055_s9 + $0x88] sm:$0xff] %v263_v17  ;;  %266 = vst [vmem:[%s3055_s9 + $0x90] sm:$0xff] %v265_v18  ;;  %v273_v22 = vld [vmem:[%s3047_s8 + $0x210] sm:$0xff]  ;;  %v275_v23 = vld [vmem:[%s3047_s8 + $0x218] sm:$0xff] }
  0x1d   : > { %268 = vst [vmem:[%s3055_s9 + $0x98] sm:$0xff] %v267_v19  ;;  %270 = vst [vmem:[%s3055_s9 + $0xa0] sm:$0xff] %v269_v20  ;;  %v277_v24 = vld [vmem:[%s3047_s8 + $0x240] sm:$0xff]  ;;  %v279_v25 = vld [vmem:[%s3047_s8 + $0x248] sm:$0xff] }
  0x1e   : > { %272 = vst [vmem:[%s3055_s9 + $0xa8] sm:$0xff] %v271_v21  ;;  %274 = vst [vmem:[%s3055_s9 + $0xb0] sm:$0xff] %v273_v22  ;;  %v281_v26 = vld [vmem:[%s3047_s8 + $0x270] sm:$0xff]  ;;  %v283_v27 = vld [vmem:[%s3047_s8 + $0x278] sm:$0xff] }
  0x1f   : > { %276 = vst [vmem:[%s3055_s9 + $0xb8] sm:$0xff] %v275_v23  ;;  %278 = vst [vmem:[%s3055_s9 + $0xc0] sm:$0xff] %v277_v24  ;;  %v285_v28 = vld [vmem:[%s3047_s8 + $0x2a0] sm:$0xff]  ;;  %v287_v29 = vld [vmem:[%s3047_s8 + $0x2a8] sm:$0xff] }
  0x20   : > { %280 = vst [vmem:[%s3055_s9 + $0xc8] sm:$0xff] %v279_v25  ;;  %282 = vst [vmem:[%s3055_s9 + $0xd0] sm:$0xff] %v281_v26  ;;  %v289_v30 = vld [vmem:[%s3047_s8 + $0x2d0] sm:$0xff]  ;;  %v291_v31 = vld [vmem:[%s3047_s8 + $0x2d8] sm:$0xff] }
  0x21   : > { %284 = vst [vmem:[%s3055_s9 + $0xd8] sm:$0xff] %v283_v27  ;;  %286 = vst [vmem:[%s3055_s9 + $0xe0] sm:$0xff] %v285_v28  ;;  %v293_v32 = vld [vmem:[%s3047_s8 + $0x300] sm:$0xff]  ;;  %v295_v33 = vld [vmem:[%s3047_s8 + $0x308] sm:$0xff] }
  0x22   : > { %288 = vst [vmem:[%s3055_s9 + $0xe8] sm:$0xff] %v287_v29  ;;  %290 = vst [vmem:[%s3055_s9 + $0xf0] sm:$0xff] %v289_v30  ;;  %v297_v34 = vld [vmem:[%s3047_s8 + $0x330] sm:$0xff]  ;;  %v299_v35 = vld [vmem:[%s3047_s8 + $0x338] sm:$0xff] }
  0x23   : > { %292 = vst [vmem:[%s3055_s9 + $0xf8] sm:$0xff] %v291_v31  ;;  %294 = vst [vmem:[%s3055_s9 + $0x100] sm:$0xff] %v293_v32  ;;  %v301_v36 = vld [vmem:[%s3047_s8 + $0x360] sm:$0xff]  ;;  %v303_v37 = vld [vmem:[%s3047_s8 + $0x368] sm:$0xff] }
  0x24   : > { %296 = vst [vmem:[%s3055_s9 + $0x108] sm:$0xff] %v295_v33  ;;  %298 = vst [vmem:[%s3055_s9 + $0x110] sm:$0xff] %v297_v34  ;;  %v305_v38 = vld [vmem:[%s3047_s8 + $0x390] sm:$0xff]  ;;  %v307_v39 = vld [vmem:[%s3047_s8 + $0x398] sm:$0xff] }
  0x25   : > { %300 = vst [vmem:[%s3055_s9 + $0x118] sm:$0xff] %v299_v35  ;;  %302 = vst [vmem:[%s3055_s9 + $0x120] sm:$0xff] %v301_v36  ;;  %v309_v40 = vld [vmem:[%s3047_s8 + $0x3c0] sm:$0xff]  ;;  %v311_v41 = vld [vmem:[%s3047_s8 + $0x3c8] sm:$0xff] }
  0x26   : > { %304 = vst [vmem:[%s3055_s9 + $0x128] sm:$0xff] %v303_v37  ;;  %306 = vst [vmem:[%s3055_s9 + $0x130] sm:$0xff] %v305_v38  ;;  %v313_v42 = vld [vmem:[%s3047_s8 + $0x3f0] sm:$0xff]  ;;  %v315_v43 = vld [vmem:[%s3047_s8 + $0x3f8] sm:$0xff] }
  0x27   : > { %308 = vst [vmem:[%s3055_s9 + $0x138] sm:$0xff] %v307_v39  ;;  %310 = vst [vmem:[%s3055_s9 + $0x140] sm:$0xff] %v309_v40  ;;  %v317_v44 = vld [vmem:[%s3047_s8 + $0x420] sm:$0xff]  ;;  %v319_v45 = vld [vmem:[%s3047_s8 + $0x428] sm:$0xff] }
  0x28   : > { %312 = vst [vmem:[%s3055_s9 + $0x148] sm:$0xff] %v311_v41  ;;  %314 = vst [vmem:[%s3055_s9 + $0x150] sm:$0xff] %v313_v42  ;;  %v321_v46 = vld [vmem:[%s3047_s8 + $0x450] sm:$0xff]  ;;  %v323_v47 = vld [vmem:[%s3047_s8 + $0x458] sm:$0xff] }
  0x29   : > { %316 = vst [vmem:[%s3055_s9 + $0x158] sm:$0xff] %v315_v43  ;;  %318 = vst [vmem:[%s3055_s9 + $0x160] sm:$0xff] %v317_v44  ;;  %v325_v48 = vld [vmem:[%s3047_s8 + $0x480] sm:$0xff]  ;;  %v327_v49 = vld [vmem:[%s3047_s8 + $0x488] sm:$0xff] }
  0x2a   : > { %320 = vst [vmem:[%s3055_s9 + $0x168] sm:$0xff] %v319_v45  ;;  %322 = vst [vmem:[%s3055_s9 + $0x170] sm:$0xff] %v321_v46  ;;  %v329_v50 = vld [vmem:[%s3047_s8 + $0x4b0] sm:$0xff]  ;;  %v331_v51 = vld [vmem:[%s3047_s8 + $0x4b8] sm:$0xff] }
  0x2b   : > { %324 = vst [vmem:[%s3055_s9 + $0x178] sm:$0xff] %v323_v47  ;;  %326 = vst [vmem:[%s3055_s9 + $0x180] sm:$0xff] %v325_v48  ;;  %v333_v52 = vld [vmem:[%s3047_s8 + $0x4e0] sm:$0xff]  ;;  %v335_v53 = vld [vmem:[%s3047_s8 + $0x4e8] sm:$0xff] }
  0x2c   : > { %328 = vst [vmem:[%s3055_s9 + $0x188] sm:$0xff] %v327_v49  ;;  %330 = vst [vmem:[%s3055_s9 + $0x190] sm:$0xff] %v329_v50  ;;  %v337_v54 = vld [vmem:[%s3047_s8 + $0x510] sm:$0xff]  ;;  %v339_v55 = vld [vmem:[%s3047_s8 + $0x518] sm:$0xff] }
  0x2d   : > { %332 = vst [vmem:[%s3055_s9 + $0x198] sm:$0xff] %v331_v51  ;;  %334 = vst [vmem:[%s3055_s9 + $0x1a0] sm:$0xff] %v333_v52  ;;  %v341_v56 = vld [vmem:[%s3047_s8 + $0x540] sm:$0xff]  ;;  %v343_v57 = vld [vmem:[%s3047_s8 + $0x548] sm:$0xff] }
  0x2e   : > { %336 = vst [vmem:[%s3055_s9 + $0x1a8] sm:$0xff] %v335_v53  ;;  %338 = vst [vmem:[%s3055_s9 + $0x1b0] sm:$0xff] %v337_v54  ;;  %v345_v58 = vld [vmem:[%s3047_s8 + $0x570] sm:$0xff]  ;;  %v347_v59 = vld [vmem:[%s3047_s8 + $0x578] sm:$0xff] }
  0x2f   : > { %340 = vst [vmem:[%s3055_s9 + $0x1b8] sm:$0xff] %v339_v55  ;;  %342 = vst [vmem:[%s3055_s9 + $0x1c0] sm:$0xff] %v341_v56  ;;  %v349_v60 = vld [vmem:[%s3047_s8 + $0x5a0] sm:$0xff]  ;;  %v351_v61 = vld [vmem:[%s3047_s8 + $0x5a8] sm:$0xff] }
  0x30   : > { %344 = vst [vmem:[%s3055_s9 + $0x1c8] sm:$0xff] %v343_v57  ;;  %346 = vst [vmem:[%s3055_s9 + $0x1d0] sm:$0xff] %v345_v58  ;;  %v353_v62 = vld [vmem:[%s3047_s8 + $0x5d0] sm:$0xff]  ;;  %v355_v63 = vld [vmem:[%s3047_s8 + $0x5d8] sm:$0xff] }
  0x31   : > { %348 = vst [vmem:[%s3055_s9 + $0x1d8] sm:$0xff] %v347_v59  ;;  %350 = vst [vmem:[%s3055_s9 + $0x1e0] sm:$0xff] %v349_v60  ;;  %v357_v0 = vld [vmem:[%s3047_s8 + $0x600] sm:$0xff]  ;;  %v359_v1 = vld [vmem:[%s3047_s8 + $0x608] sm:$0xff] }
  0x32   : > { %352 = vst [vmem:[%s3055_s9 + $0x1e8] sm:$0xff] %v351_v61  ;;  %354 = vst [vmem:[%s3055_s9 + $0x1f0] sm:$0xff] %v353_v62  ;;  %v361_v2 = vld [vmem:[%s3047_s8 + $0x630] sm:$0xff]  ;;  %v363_v3 = vld [vmem:[%s3047_s8 + $0x638] sm:$0xff] }
  0x33   : > { %356 = vst [vmem:[%s3055_s9 + $0x1f8] sm:$0xff] %v355_v63  ;;  %358 = vst [vmem:[%s3055_s9 + $0x200] sm:$0xff] %v357_v0  ;;  %v365_v4 = vld [vmem:[%s3047_s8 + $0x660] sm:$0xff]  ;;  %v367_v5 = vld [vmem:[%s3047_s8 + $0x668] sm:$0xff] }
  0x34   : > { %360 = vst [vmem:[%s3055_s9 + $0x208] sm:$0xff] %v359_v1  ;;  %362 = vst [vmem:[%s3055_s9 + $0x210] sm:$0xff] %v361_v2  ;;  %v369_v6 = vld [vmem:[%s3047_s8 + $0x690] sm:$0xff]  ;;  %v371_v7 = vld [vmem:[%s3047_s8 + $0x698] sm:$0xff] }
  0x35   : > { %364 = vst [vmem:[%s3055_s9 + $0x218] sm:$0xff] %v363_v3  ;;  %366 = vst [vmem:[%s3055_s9 + $0x220] sm:$0xff] %v365_v4  ;;  %v373_v8 = vld [vmem:[%s3047_s8 + $0x6c0] sm:$0xff]  ;;  %v375_v9 = vld [vmem:[%s3047_s8 + $0x6c8] sm:$0xff] }
  0x36   : > { %368 = vst [vmem:[%s3055_s9 + $0x228] sm:$0xff] %v367_v5  ;;  %370 = vst [vmem:[%s3055_s9 + $0x230] sm:$0xff] %v369_v6  ;;  %v377_v10 = vld [vmem:[%s3047_s8 + $0x6f0] sm:$0xff]  ;;  %v379_v11 = vld [vmem:[%s3047_s8 + $0x6f8] sm:$0xff] }
  0x37   : > { %372 = vst [vmem:[%s3055_s9 + $0x238] sm:$0xff] %v371_v7  ;;  %374 = vst [vmem:[%s3055_s9 + $0x240] sm:$0xff] %v373_v8  ;;  %v381_v12 = vld [vmem:[%s3047_s8 + $0x720] sm:$0xff]  ;;  %v383_v13 = vld [vmem:[%s3047_s8 + $0x728] sm:$0xff] }
  0x38   : > { %376 = vst [vmem:[%s3055_s9 + $0x248] sm:$0xff] %v375_v9  ;;  %378 = vst [vmem:[%s3055_s9 + $0x250] sm:$0xff] %v377_v10  ;;  %v385_v14 = vld [vmem:[%s3047_s8 + $0x750] sm:$0xff]  ;;  %v387_v15 = vld [vmem:[%s3047_s8 + $0x758] sm:$0xff] }
  0x39   : > { %380 = vst [vmem:[%s3055_s9 + $0x258] sm:$0xff] %v379_v11  ;;  %382 = vst [vmem:[%s3055_s9 + $0x260] sm:$0xff] %v381_v12  ;;  %v389_v16 = vld [vmem:[%s3047_s8 + $0x780] sm:$0xff]  ;;  %v391_v17 = vld [vmem:[%s3047_s8 + $0x788] sm:$0xff] }
  0x3a   : > { %384 = vst [vmem:[%s3055_s9 + $0x268] sm:$0xff] %v383_v13  ;;  %386 = vst [vmem:[%s3055_s9 + $0x270] sm:$0xff] %v385_v14  ;;  %v393_v18 = vld [vmem:[%s3047_s8 + $0x7b0] sm:$0xff]  ;;  %v395_v19 = vld [vmem:[%s3047_s8 + $0x7b8] sm:$0xff] }
  0x3b   : > { %388 = vst [vmem:[%s3055_s9 + $0x278] sm:$0xff] %v387_v15  ;;  %390 = vst [vmem:[%s3055_s9 + $0x280] sm:$0xff] %v389_v16  ;;  %v397_v20 = vld [vmem:[%s3047_s8 + $0x7e0] sm:$0xff]  ;;  %v399_v21 = vld [vmem:[%s3047_s8 + $0x7e8] sm:$0xff] }
  0x3c   : > { %392 = vst [vmem:[%s3055_s9 + $0x288] sm:$0xff] %v391_v17  ;;  %394 = vst [vmem:[%s3055_s9 + $0x290] sm:$0xff] %v393_v18  ;;  %v401_v22 = vld [vmem:[%s3047_s8 + $0x810] sm:$0xff]  ;;  %v403_v23 = vld [vmem:[%s3047_s8 + $0x818] sm:$0xff] }
  0x3d   : > { %396 = vst [vmem:[%s3055_s9 + $0x298] sm:$0xff] %v395_v19  ;;  %398 = vst [vmem:[%s3055_s9 + $0x2a0] sm:$0xff] %v397_v20  ;;  %v405_v24 = vld [vmem:[%s3047_s8 + $0x840] sm:$0xff]  ;;  %v407_v25 = vld [vmem:[%s3047_s8 + $0x848] sm:$0xff] }
  0x3e   : > { %400 = vst [vmem:[%s3055_s9 + $0x2a8] sm:$0xff] %v399_v21  ;;  %402 = vst [vmem:[%s3055_s9 + $0x2b0] sm:$0xff] %v401_v22  ;;  %v409_v26 = vld [vmem:[%s3047_s8 + $0x870] sm:$0xff]  ;;  %v411_v27 = vld [vmem:[%s3047_s8 + $0x878] sm:$0xff] }
  0x3f   : > { %404 = vst [vmem:[%s3055_s9 + $0x2b8] sm:$0xff] %v403_v23  ;;  %406 = vst [vmem:[%s3055_s9 + $0x2c0] sm:$0xff] %v405_v24  ;;  %v413_v28 = vld [vmem:[%s3047_s8 + $0x8a0] sm:$0xff]  ;;  %v415_v29 = vld [vmem:[%s3047_s8 + $0x8a8] sm:$0xff] }
  0x40   : > { %408 = vst [vmem:[%s3055_s9 + $0x2c8] sm:$0xff] %v407_v25  ;;  %410 = vst [vmem:[%s3055_s9 + $0x2d0] sm:$0xff] %v409_v26  ;;  %v417_v30 = vld [vmem:[%s3047_s8 + $0x8d0] sm:$0xff]  ;;  %v419_v31 = vld [vmem:[%s3047_s8 + $0x8d8] sm:$0xff] }
  0x41   : > { %412 = vst [vmem:[%s3055_s9 + $0x2d8] sm:$0xff] %v411_v27  ;;  %414 = vst [vmem:[%s3055_s9 + $0x2e0] sm:$0xff] %v413_v28 }
  0x42   : > { %416 = vst [vmem:[%s3055_s9 + $0x2e8] sm:$0xff] %v415_v29  ;;  %418 = vst [vmem:[%s3055_s9 + $0x2f0] sm:$0xff] %v417_v30 }
  0x43   : > { %420 = vst [vmem:[%s3055_s9 + $0x2f8] sm:$0xff] %v419_v31 }
  0x44 PF: > { %p2298_p6 = scmp.ge.s32.totalorder %s2966_s22, 1  ;;  %p443_p7 = scmp.lt.s32.totalorder %s2966_s22, 4 }
  0x46   : > { %p444_p8 = pnand %p2298_p6, %p443_p7 }
  0x47   : > { %s450_s10 = sand.u32 (!%p444_p8), 1, %s2950_s18   ;;  %s2299_s11 = sshll.u32 (!%p444_p8), %s2958_s20, 2 }
  0x48   : > { %447 = sbr.rel (%p444_p8) target bundleno = 698 (0x2ba), region = 59  ;;  %p497_p9 = scmp.lt.s32.totalorder (!%p444_p8), %s2299_s11, 11 }
  0x49   : > { %s2569_s12 = smul.u32 (!%p444_p8), 768, %s450_s10  ;;  %s2300_s13 = sshll.u32 (!%p444_p8), %s2958_s20, 6 }
  0x4a   : > { %p502_p10 = scmp.lt.s32.totalorder (!%p444_p8), %s2300_s13, 191  ;;  %p2302_p11 = scmp.ne.s32.totalorder (!%p444_p8), %s2958_s20, 0 }
  0x4b   : > { %s3259_s18 = scalar_lea.vmem (!%p444_p8), [#allocation3], %s2569_s12 }
  0x4f   : > { %s3559_s11 = smov (!%p497_p9, %s2299_s11), 11  ;;  %s3561_s13 = smov (!%p502_p10, %s2300_s13), 191 }
  0x50   : > { %s499_s16 = scalar_lea.vmem %s3547_s2, %s3559_s11  ;;  %s2570_s17 = smul.u32 12, %s3561_s13  ;;  %v2968_v32 = vmov (!%p2302_p11), 0.0  }
  0x51   : > { %513 = sbr.rel (%p2302_p11) target bundleno = 88 (0x58), region = 67  ;;  %514 = vst [vmem:[#allocation2] sm:$0xff] (!%p2302_p11), %v2968_v32  ;;  %515 = vst [vmem:[#allocation2 + $0x8] sm:$0xff] (!%p2302_p11), %v2968_v32 }
  0x52   : > { %s3257_s28 = scalar_lea.vmem %s3548_s3, %s2570_s17  ;;  %516 = vst [vmem:[#allocation2 + $0x10] sm:$0xff] (!%p2302_p11), %v2968_v32  ;;  %517 = vst [vmem:[#allocation2 + $0x18] sm:$0xff] (!%p2302_p11), %v2968_v32 }
  0x53   : > { %518 = vst [vmem:[#allocation2 + $0x20] sm:$0xff] (!%p2302_p11), %v2968_v32  ;;  %519 = vst [vmem:[#allocation2 + $0x28] sm:$0xff] (!%p2302_p11), %v2968_v32 }
  0x58 PF: > { %v2622_v33 = vld [vmem:[%s3259_s18 + $0x4] ss:$16 sps:$4 sm:$0xff]   ;;  %v2969_v35 = vmov 0   ;;  %v2626_v36 = vld [vmem:[%s3259_s18] ss:$16 sps:$4 sm:$0xff]   ;;  %p2498_p12 = scmp.ne.s32.totalorder %s2958_s20, 2 }
  0x59   : > { %v2624_v34 = vld [vmem:[%s3259_s18 + $0x204] ss:$16 sps:$4 sm:$0xff]   ;;  %1213 = vmatprep.mubr.bf16.mxu1 %v2969_v35  ;;  %1138 = vmatprep.subr.bf16.mxu0 %v2622_v33  ;;  %v2627_v37 = vld [vmem:[%s3259_s18 + $0x200] ss:$16 sps:$4 sm:$0xff]   ;;  %v2675_v3 = vld [vmem:[%s3259_s18 + $0xc] ss:$16 sps:$4 sm:$0xff]  }
  0x5a   : > { %1181 = vmatprep.subr.bf16.mxu1 %v2624_v34  ;;  %v2628_v38 = vld [vmem:[%s3259_s18 + $0x24] ss:$16 sps:$4 sm:$0xff]   ;;  %1139 = vmatpush1.bf16.msra.mxu0 %v2626_v36  ;;  %v2632_v40 = vld [vmem:[%s3259_s18 + $0x20] ss:$16 sps:$4 sm:$0xff]   ;;  %v2673_v5 = vld [vmem:[%s3259_s18 + $0x8] ss:$16 sps:$4 sm:$0xff]  }
  0x5b   : > { %1182 = vmatpush1.bf16.msra.mxu1 %v2627_v37  ;;  %v2630_v39 = vld [vmem:[%s3259_s18 + $0x224] ss:$16 sps:$4 sm:$0xff]   ;;  %1140 = vmatprep.subr.bf16.mxu0 %v2628_v38  ;;  %v2633_v41 = vld [vmem:[%s3259_s18 + $0x220] ss:$16 sps:$4 sm:$0xff]   ;;  %v2681_v8 = vld [vmem:[%s3259_s18 + $0x2c] ss:$16 sps:$4 sm:$0xff]  }
  0x5c   : > { %1183 = vmatprep.subr.bf16.mxu1 %v2630_v39  ;;  %v2634_v42 = vld [vmem:[%s3259_s18 + $0x44] ss:$16 sps:$4 sm:$0xff]   ;;  %v2638_v44 = vld [vmem:[%s3259_s18 + $0x40] ss:$16 sps:$4 sm:$0xff]   ;;  %v2679_v9 = vld [vmem:[%s3259_s18 + $0x28] ss:$16 sps:$4 sm:$0xff]  }
  0x5d   : > { %v2636_v43 = vld [vmem:[%s3259_s18 + $0x244] ss:$16 sps:$4 sm:$0xff]   ;;  %v2639_v45 = vld [vmem:[%s3259_s18 + $0x240] ss:$16 sps:$4 sm:$0xff]   ;;  %v2687_v12 = vld [vmem:[%s3259_s18 + $0x4c] ss:$16 sps:$4 sm:$0xff]  }
  0x5e   : > { %1141 = vmatpush1.bf16.msra.mxu0 %v2632_v40  ;;  %v2640_v46 = vld [vmem:[%s3259_s18 + $0x64] ss:$16 sps:$4 sm:$0xff]   ;;  %v2644_v48 = vld [vmem:[%s3259_s18 + $0x60] ss:$16 sps:$4 sm:$0xff]   ;;  %v2685_v13 = vld [vmem:[%s3259_s18 + $0x48] ss:$16 sps:$4 sm:$0xff]  }
  0x5f   : > { %1184 = vmatpush1.bf16.msra.mxu1 %v2633_v41  ;;  %1142 = vmatprep.subr.bf16.mxu0 %v2634_v42  ;;  %v2642_v47 = vld [vmem:[%s3259_s18 + $0x264] ss:$16 sps:$4 sm:$0xff]   ;;  %v2645_v49 = vld [vmem:[%s3259_s18 + $0x260] ss:$16 sps:$4 sm:$0xff]   ;;  %v2693_v16 = vld [vmem:[%s3259_s18 + $0x6c] ss:$16 sps:$4 sm:$0xff]  }
  0x60   : > { %1185 = vmatprep.subr.bf16.mxu1 %v2636_v43  ;;  %v2646_v50 = vld [vmem:[%s3259_s18 + $0x84] ss:$16 sps:$4 sm:$0xff]   ;;  %v2650_v52 = vld [vmem:[%s3259_s18 + $0x80] ss:$16 sps:$4 sm:$0xff]   ;;  %v2691_v17 = vld [vmem:[%s3259_s18 + $0x68] ss:$16 sps:$4 sm:$0xff]  }
  0x61   : > { %v2648_v51 = vld [vmem:[%s3259_s18 + $0x284] ss:$16 sps:$4 sm:$0xff]   ;;  %v2651_v53 = vld [vmem:[%s3259_s18 + $0x280] ss:$16 sps:$4 sm:$0xff]   ;;  %v2699_v21 = vld [vmem:[%s3259_s18 + $0x8c] ss:$16 sps:$4 sm:$0xff]  }
  0x62   : > { %1143 = vmatpush1.bf16.msra.mxu0 %v2638_v44  ;;  %v2652_v54 = vld [vmem:[%s3259_s18 + $0xa4] ss:$16 sps:$4 sm:$0xff]   ;;  %v2656_v56 = vld [vmem:[%s3259_s18 + $0xa0] ss:$16 sps:$4 sm:$0xff]   ;;  %v2697_v22 = vld [vmem:[%s3259_s18 + $0x88] ss:$16 sps:$4 sm:$0xff]  }
  0x63   : > { %1186 = vmatpush1.bf16.msra.mxu1 %v2639_v45  ;;  %1144 = vmatprep.subr.bf16.mxu0 %v2640_v46  ;;  %v2654_v55 = vld [vmem:[%s3259_s18 + $0x2a4] ss:$16 sps:$4 sm:$0xff]   ;;  %v2657_v57 = vld [vmem:[%s3259_s18 + $0x2a0] ss:$16 sps:$4 sm:$0xff]   ;;  %v2705_v25 = vld [vmem:[%s3259_s18 + $0xac] ss:$16 sps:$4 sm:$0xff]  }
  0x64   : > { %1187 = vmatprep.subr.bf16.mxu1 %v2642_v47  ;;  %v2658_v58 = vld [vmem:[%s3259_s18 + $0xc4] ss:$16 sps:$4 sm:$0xff]   ;;  %v2662_v60 = vld [vmem:[%s3259_s18 + $0xc0] ss:$16 sps:$4 sm:$0xff]   ;;  %v2703_v26 = vld [vmem:[%s3259_s18 + $0xa8] ss:$16 sps:$4 sm:$0xff]  }
  0x65   : > { %v2660_v59 = vld [vmem:[%s3259_s18 + $0x2c4] ss:$16 sps:$4 sm:$0xff]   ;;  %v2663_v61 = vld [vmem:[%s3259_s18 + $0x2c0] ss:$16 sps:$4 sm:$0xff]   ;;  %v2711_v29 = vld [vmem:[%s3259_s18 + $0xcc] ss:$16 sps:$4 sm:$0xff]  }
  0x66   : > { %1145 = vmatpush1.bf16.msra.mxu0 %v2644_v48  ;;  %v2664_v62 = vld [vmem:[%s3259_s18 + $0xe4] ss:$16 sps:$4 sm:$0xff]   ;;  %v2668_v0 = vld [vmem:[%s3259_s18 + $0xe0] ss:$16 sps:$4 sm:$0xff]   ;;  %v2709_v30 = vld [vmem:[%s3259_s18 + $0xc8] ss:$16 sps:$4 sm:$0xff]  }
  0x67   : > { %1188 = vmatpush1.bf16.msra.mxu1 %v2645_v49  ;;  %1146 = vmatprep.subr.bf16.mxu0 %v2646_v50  ;;  %v2666_v63 = vld [vmem:[%s3259_s18 + $0x2e4] ss:$16 sps:$4 sm:$0xff]   ;;  %v2669_v1 = vld [vmem:[%s3259_s18 + $0x2e0] ss:$16 sps:$4 sm:$0xff]   ;;  %v2717_v33 = vld [vmem:[%s3259_s18 + $0xec] ss:$16 sps:$4 sm:$0xff]  }
  0x68   : > { %1189 = vmatprep.subr.bf16.mxu1 %v2648_v51  ;;  %v2670_v2 = vld [vmem:[%s3259_s18 + $0x104] ss:$16 sps:$4 sm:$0xff]   ;;  %v2676_v6 = vld [vmem:[%s3259_s18 + $0x100] ss:$16 sps:$4 sm:$0xff]   ;;  %v2715_v34 = vld [vmem:[%s3259_s18 + $0xe8] ss:$16 sps:$4 sm:$0xff]  }
  0x69   : > { %v3300_v4 = vld [vmem:[%s3545_s0 + $0x8] ss:$12 sps:$4 sm:$0xff]   ;;  %v2682_v10 = vld [vmem:[%s3259_s18 + $0x120] ss:$16 sps:$4 sm:$0xff]   ;;  %v2724_v37 = vld [vmem:[%s3259_s18 + $0x10c] ss:$16 sps:$4 sm:$0xff]  }
  0x6a   : > { %1147 = vmatpush1.bf16.msra.mxu0 %v2650_v52  ;;  %v2677_v7 = vld [vmem:[%s3259_s18 + $0x124] ss:$16 sps:$4 sm:$0xff]   ;;  %v2688_v14 = vld [vmem:[%s3259_s18 + $0x140] ss:$16 sps:$4 sm:$0xff]   ;;  %v2722_v39 = vld [vmem:[%s3259_s18 + $0x108] ss:$16 sps:$4 sm:$0xff]  }
  0x6b   : > { %1190 = vmatpush1.bf16.msra.mxu1 %v2651_v53  ;;  %1148 = vmatprep.subr.bf16.mxu0 %v2652_v54  ;;  %v2683_v11 = vld [vmem:[%s3259_s18 + $0x144] ss:$16 sps:$4 sm:$0xff]   ;;  %v2694_v18 = vld [vmem:[%s3259_s18 + $0x160] ss:$16 sps:$4 sm:$0xff]   ;;  %v2727_v40 = vld [vmem:[%s3259_s18 + $0x12c] ss:$16 sps:$4 sm:$0xff]  }
  0x6c   : > { %1191 = vmatprep.subr.bf16.mxu1 %v2654_v55  ;;  %v2689_v15 = vld [vmem:[%s3259_s18 + $0x164] ss:$16 sps:$4 sm:$0xff]   ;;  %v2700_v23 = vld [vmem:[%s3259_s18 + $0x180] ss:$16 sps:$4 sm:$0xff]   ;;  %v2725_v43 = vld [vmem:[%s3259_s18 + $0x128] ss:$16 sps:$4 sm:$0xff]  }
  0x6d   : > { %v2695_v19 = vld [vmem:[%s3259_s18 + $0x184] ss:$16 sps:$4 sm:$0xff]   ;;  %v2706_v27 = vld [vmem:[%s3259_s18 + $0x1a0] ss:$16 sps:$4 sm:$0xff]   ;;  %v2775_v44 = vld [vmem:[%s3257_s28 + $0x1c] ss:$12 sps:$4 sm:$0xff]  }
  0x6e   : > { %1149 = vmatpush1.bf16.msra.mxu0 %v2656_v56  ;;  %v2721_v20 = vld [vmem:[%s3545_s0 + $0x4] ss:$12 sps:$4 sm:$0xff]   ;;  %v2719_v38 = vld [vmem:[%s3545_s0] ss:$12 sps:$4 sm:$0xff]   ;;  %v2728_v47 = vld [vmem:[%s3259_s18 + $0x148] ss:$16 sps:$4 sm:$0xff]  }
  0x6f   : > { %1192 = vmatpush1.bf16.msra.mxu1 %v2657_v57  ;;  %1150 = vmatprep.subr.bf16.mxu0 %v2658_v58  ;;  %v2701_v24 = vld [vmem:[%s3259_s18 + $0x1a4] ss:$16 sps:$4 sm:$0xff]   ;;  %v2712_v31 = vld [vmem:[%s3259_s18 + $0x1c0] ss:$16 sps:$4 sm:$0xff]   ;;  %v2730_v45 = vld [vmem:[%s3259_s18 + $0x14c] ss:$16 sps:$4 sm:$0xff]  }
  0x70   : > { %1193 = vmatprep.subr.bf16.mxu1 %v2660_v59  ;;  %1170 = vmatprep.mubr.bf16.mxu0 %v2721_v20  ;;  %v2707_v28 = vld [vmem:[%s3259_s18 + $0x1c4] ss:$16 sps:$4 sm:$0xff]   ;;  %v2718_v36 = vld [vmem:[%s3259_s18 + $0x1e0] ss:$16 sps:$4 sm:$0xff]   ;;  %v2733_v49 = vld [vmem:[%s3259_s18 + $0x16c] ss:$16 sps:$4 sm:$0xff]  }
  0x71   : > { %v2713_v32 = vld [vmem:[%s3259_s18 + $0x1e4] ss:$16 sps:$4 sm:$0xff]   ;;  %v2770_v41 = vld [vmem:[%s3257_s28] ss:$12 sps:$4 sm:$0xff]   ;;  %v2776_v50 = vld [vmem:[%s3257_s28 + $0x30] ss:$12 sps:$4 sm:$0xff]  }
  0x72   : > { %1151 = vmatpush1.bf16.msra.mxu0 %v2662_v60  ;;  %v2772_v42 = vld [vmem:[%s3257_s28 + $0x4] ss:$12 sps:$4 sm:$0xff]   ;;  %v2778_v48 = vld [vmem:[%s3257_s28 + $0x34] ss:$12 sps:$4 sm:$0xff]   ;;  %v2781_v51 = vld [vmem:[%s3257_s28 + $0x4c] ss:$12 sps:$4 sm:$0xff]  }
  0x73   : > { %1194 = vmatpush1.bf16.msra.mxu1 %v2663_v61  ;;  %1152 = vmatprep.subr.bf16.mxu0 %v2664_v62  ;;  %v2773_v46 = vld [vmem:[%s3257_s28 + $0x18] ss:$12 sps:$4 sm:$0xff]   ;;  %v2736_v53 = vld [vmem:[%s3259_s18 + $0x18c] ss:$16 sps:$4 sm:$0xff]   ;;  %v2779_v54 = vld [vmem:[%s3257_s28 + $0x48] ss:$12 sps:$4 sm:$0xff]  }
  0x74   : > { %1195 = vmatprep.subr.bf16.mxu1 %v2666_v63  ;;  %v2731_v52 = vld [vmem:[%s3259_s18 + $0x168] ss:$16 sps:$4 sm:$0xff]   ;;  %v2784_v55 = vld [vmem:[%s3257_s28 + $0x64] ss:$12 sps:$4 sm:$0xff]   ;;  %v2739_v57 = vld [vmem:[%s3259_s18 + $0x1ac] ss:$16 sps:$4 sm:$0xff]  }
  0x75   : > { %v2734_v56 = vld [vmem:[%s3259_s18 + $0x188] ss:$16 sps:$4 sm:$0xff]   ;;  %v2782_v58 = vld [vmem:[%s3257_s28 + $0x60] ss:$12 sps:$4 sm:$0xff]  }
  0x76   : > { %1153 = vmatpush1.bf16.msra.mxu0 %v2668_v0  ;;  %v2737_v59 = vld [vmem:[%s3259_s18 + $0x1a8] ss:$16 sps:$4 sm:$0xff]   ;;  %v2742_v60 = vld [vmem:[%s3259_s18 + $0x1cc] ss:$16 sps:$4 sm:$0xff]  }
  0x77   : > { %1196 = vmatpush1.bf16.msra.mxu1 %v2669_v1  ;;  %1154 = vmatprep.subr.bf16.mxu0 %v2670_v2  ;;  %v2740_v61 = vld [vmem:[%s3259_s18 + $0x1c8] ss:$16 sps:$4 sm:$0xff]   ;;  %v2745_v62 = vld [vmem:[%s3259_s18 + $0x1ec] ss:$16 sps:$4 sm:$0xff]  }
  0x78   : > { %1224 = vmatprep.subr.bf16.mxu1 %v2675_v3  ;;  %v2743_v63 = vld [vmem:[%s3259_s18 + $0x1e8] ss:$16 sps:$4 sm:$0xff]   ;;  %v2748_v0 = vld [vmem:[%s3259_s18 + $0x20c] ss:$16 sps:$4 sm:$0xff]  }
  0x79   : > { %v2746_v1 = vld [vmem:[%s3259_s18 + $0x208] ss:$16 sps:$4 sm:$0xff]   ;;  %v2751_v2 = vld [vmem:[%s3259_s18 + $0x22c] ss:$16 sps:$4 sm:$0xff]  }
  0x7a   : > { %1214 = vmatmul.mubr.bf16.vlgmr.msra.gmra.mrb[0].mxu1 %v3300_v4  ;;  %1155 = vmatpush1.bf16.msra.mxu0 %v2676_v6  ;;  %v2749_v3 = vld [vmem:[%s3259_s18 + $0x228] ss:$16 sps:$4 sm:$0xff]  }
  0x7b   : > { %1225 = vmatpush1.bf16.msra.mxu1 %v2673_v5  ;;  %1156 = vmatprep.subr.bf16.mxu0 %v2677_v7  ;;  %v2754_v5 = vld [vmem:[%s3259_s18 + $0x24c] ss:$16 sps:$4 sm:$0xff]   ;;  %v2752_v6 = vld [vmem:[%s3259_s18 + $0x248] ss:$16 sps:$4 sm:$0xff]  }
  0x7c   : > { %1226 = vmatprep.subr.bf16.mxu1 %v2681_v8  ;;  %1256 = vmatprep.mubr.bf16.mxu1 %v2721_v20  ;;  %v2757_v7 = vld [vmem:[%s3259_s18 + $0x26c] ss:$16 sps:$4 sm:$0xff]   ;;  %v2755_v8 = vld [vmem:[%s3259_s18 + $0x268] ss:$16 sps:$4 sm:$0xff]  }
  0x7d   : > { %v2791_v20 = vld [vmem:[%s3257_s28 + $0xa8] ss:$12 sps:$4 sm:$0xff]  }
  0x7e   : > { %1157 = vmatpush1.bf16.msra.mxu0 %v2682_v10  ;;  %v2758_v10 = vld [vmem:[%s3259_s18 + $0x288] ss:$16 sps:$4 sm:$0xff]  }
  0x7f   : > { %1227 = vmatpush1.bf16.msra.mxu1 %v2679_v9  ;;  %1158 = vmatprep.subr.bf16.mxu0 %v2683_v11  ;;  %v2760_v9 = vld [vmem:[%s3259_s18 + $0x28c] ss:$16 sps:$4 sm:$0xff]   ;;  %v2761_v11 = vld [vmem:[%s3259_s18 + $0x2a8] ss:$16 sps:$4 sm:$0xff]  }
  0x80   : > { %1228 = vmatprep.subr.bf16.mxu1 %v2687_v12  ;;  %v2787_v12 = vld [vmem:[%s3257_s28 + $0x7c] ss:$12 sps:$4 sm:$0xff]  }
  0x82   : > { %1159 = vmatpush1.bf16.msra.mxu0 %v2688_v14  ;;  %v2785_v14 = vld [vmem:[%s3257_s28 + $0x78] ss:$12 sps:$4 sm:$0xff]  }
  0x83   : > { %1229 = vmatpush1.bf16.msra.mxu1 %v2685_v13  ;;  %1160 = vmatprep.subr.bf16.mxu0 %v2689_v15  ;;  %v2766_v13 = vld [vmem:[%s3259_s18 + $0x2cc] ss:$16 sps:$4 sm:$0xff]   ;;  %v2764_v15 = vld [vmem:[%s3259_s18 + $0x2c8] ss:$16 sps:$4 sm:$0xff]  }
  0x84   : > { %1230 = vmatprep.subr.bf16.mxu1 %v2693_v16  ;;  %v2790_v16 = vld [vmem:[%s3257_s28 + $0x94] ss:$12 sps:$4 sm:$0xff]  }
  0x86   : > { %1161 = vmatpush1.bf16.msra.mxu0 %v2694_v18  ;;  %v2788_v18 = vld [vmem:[%s3257_s28 + $0x90] ss:$12 sps:$4 sm:$0xff]  }
  0x87   : > { %1231 = vmatpush1.bf16.msra.mxu1 %v2691_v17  ;;  %1162 = vmatprep.subr.bf16.mxu0 %v2695_v19  ;;  %v2769_v17 = vld [vmem:[%s3259_s18 + $0x2ec] ss:$16 sps:$4 sm:$0xff]  }
  0x88   : > { %1232 = vmatprep.subr.bf16.mxu1 %v2699_v21  ;;  %v2793_v19 = vld [vmem:[%s3257_s28 + $0xac] ss:$12 sps:$4 sm:$0xff]  }
  0x89   : > { %v2767_v21 = vld [vmem:[%s3259_s18 + $0x2e8] ss:$16 sps:$4 sm:$0xff]  }
  0x8a   : > { %1163 = vmatpush1.bf16.msra.mxu0 %v2700_v23  ;;  %v2797_v23 = vld [vmem:[%s3257_s28 + $0xc8] ss:$12 sps:$4 sm:$0xff]  }
  0x8b   : > { %1233 = vmatpush1.bf16.msra.mxu1 %v2697_v22  ;;  %1164 = vmatprep.subr.bf16.mxu0 %v2701_v24  ;;  %v2796_v22 = vld [vmem:[%s3257_s28 + $0xc4] ss:$12 sps:$4 sm:$0xff]   ;;  %v2794_v24 = vld [vmem:[%s3257_s28 + $0xc0] ss:$12 sps:$4 sm:$0xff]  }
  0x8c   : > { %1234 = vmatprep.subr.bf16.mxu1 %v2705_v25  ;;  %v2798_v25 = vld [vmem:[%s3257_s28 + $0x8] ss:$12 sps:$4 sm:$0xff]  }
  0x8e   : > { %1165 = vmatpush1.bf16.msra.mxu0 %v2706_v27  ;;  %v2802_v27 = vld [vmem:[%s3257_s28 + $0xe0] ss:$12 sps:$4 sm:$0xff]  }
  0x8f   : > { %1235 = vmatpush1.bf16.msra.mxu1 %v2703_v26  ;;  %1166 = vmatprep.subr.bf16.mxu0 %v2707_v28  ;;  %v2801_v26 = vld [vmem:[%s3257_s28 + $0xdc] ss:$12 sps:$4 sm:$0xff]   ;;  %v2799_v28 = vld [vmem:[%s3257_s28 + $0xd8] ss:$12 sps:$4 sm:$0xff]  }
  0x90   : > { %1236 = vmatprep.subr.bf16.mxu1 %v2711_v29  ;;  %v2803_v29 = vld [vmem:[%s3257_s28 + $0x20] ss:$12 sps:$4 sm:$0xff]  }
  0x92   : > { %1167 = vmatpush1.bf16.msra.mxu0 %v2712_v31  ;;  %v2807_v31 = vld [vmem:[%s3257_s28 + $0xf8] ss:$12 sps:$4 sm:$0xff]  }
  0x93   : > { %1237 = vmatpush1.bf16.msra.mxu1 %v2709_v30  ;;  %1168 = vmatprep.subr.bf16.mxu0 %v2713_v32  ;;  %v2806_v30 = vld [vmem:[%s3257_s28 + $0xf4] ss:$12 sps:$4 sm:$0xff]   ;;  %v2804_v32 = vld [vmem:[%s3257_s28 + $0xf0] ss:$12 sps:$4 sm:$0xff]  }
  0x94   : > { %1238 = vmatprep.subr.bf16.mxu1 %v2717_v33  ;;  %v2808_v33 = vld [vmem:[%s3257_s28 + $0x38] ss:$12 sps:$4 sm:$0xff]  }
  0x96   : > { %1169 = vmatpush1.bf16.msra.mxu0 %v2718_v36  ;;  %v2809_v36 = vld [vmem:[%s3257_s28 + $0x108] ss:$12 sps:$4 sm:$0xff]  }
  0x97   : > { %1239 = vmatpush1.bf16.msra.mxu1 %v2715_v34  ;;  %1968 = vmatprep.subr.bf16.mxu0 %v2772_v42  ;;  %v2812_v34 = vld [vmem:[%s3257_s28 + $0x110] ss:$12 sps:$4 sm:$0xff]  }
  0x98   : > { %1240 = vmatprep.subr.bf16.mxu1 %v2724_v37  ;;  %v2813_v37 = vld [vmem:[%s3257_s28 + $0x50] ss:$12 sps:$4 sm:$0xff]  }
  0x99   : > { %1171 = vmatmul.mubr.bf16.vlgmr.msra.gmra.mrb[0].mxu0 %v2719_v38  ;;  %v2821_v42 = vld [vmem:[%s3257_s28 + $0x13c] ss:$12 sps:$4 sm:$0xff]  }
  0x9a   : > { %1969 = vmatpush1.bf16.msra.mxu0 %v2770_v41  ;;  %v2818_v41 = vld [vmem:[%s3257_s28 + $0x68] ss:$12 sps:$4 sm:$0xff]  }
  0x9b   : > { %1241 = vmatpush1.bf16.msra.mxu1 %v2722_v39  ;;  %1970 = vmatprep.subr.bf16.mxu0 %v2775_v44  ;;  %v2817_v39 = vld [vmem:[%s3257_s28 + $0x128] ss:$12 sps:$4 sm:$0xff]   ;;  %v2822_v44 = vld [vmem:[%s3257_s28 + $0x140] ss:$12 sps:$4 sm:$0xff]  }
  0x9c   : > { %1242 = vmatprep.subr.bf16.mxu1 %v2727_v40  ;;  %v2814_v40 = vld [vmem:[%s3257_s28 + $0x120] ss:$12 sps:$4 sm:$0xff]  }
  0x9e   : > { %1971 = vmatpush1.bf16.msra.mxu0 %v2773_v46  ;;  %v2826_v46 = vld [vmem:[%s3257_s28 + $0x154] ss:$12 sps:$4 sm:$0xff]  }
  0x9f   : > { %1243 = vmatpush1.bf16.msra.mxu1 %v2725_v43  ;;  %1972 = vmatprep.subr.bf16.mxu0 %v2778_v48  ;;  %v2819_v43 = vld [vmem:[%s3257_s28 + $0x138] ss:$12 sps:$4 sm:$0xff]  }
  0xa0   : > { %1244 = vmatprep.subr.bf16.mxu1 %v2730_v45  ;;  %v2823_v45 = vld [vmem:[%s3257_s28 + $0x80] ss:$12 sps:$4 sm:$0xff]   ;;  %v2827_v48 = vld [vmem:[%s3257_s28 + $0x158] ss:$12 sps:$4 sm:$0xff]  }
  0xa2   : > { %1973 = vmatpush1.bf16.msra.mxu0 %v2776_v50  ;;  %v2831_v50 = vld [vmem:[%s3257_s28 + $0x16c] ss:$12 sps:$4 sm:$0xff]  }
  0xa3   : > { %1245 = vmatpush1.bf16.msra.mxu1 %v2728_v47  ;;  %1974 = vmatprep.subr.bf16.mxu0 %v2781_v51  ;;  %v2824_v47 = vld [vmem:[%s3257_s28 + $0x150] ss:$12 sps:$4 sm:$0xff]   ;;  %v2829_v51 = vld [vmem:[%s3257_s28 + $0x168] ss:$12 sps:$4 sm:$0xff]  }
  0xa4   : > { %1246 = vmatprep.subr.bf16.mxu1 %v2733_v49  ;;  %v2828_v49 = vld [vmem:[%s3257_s28 + $0x98] ss:$12 sps:$4 sm:$0xff]  }
  0xa6   : > { %1975 = vmatpush1.bf16.msra.mxu0 %v2779_v54  ;;  %v2836_v54 = vld [vmem:[%s3257_s28 + $0x184] ss:$12 sps:$4 sm:$0xff]  }
  0xa7   : > { %1247 = vmatpush1.bf16.msra.mxu1 %v2731_v52  ;;  %1976 = vmatprep.subr.bf16.mxu0 %v2784_v55  ;;  %v2832_v52 = vld [vmem:[%s3257_s28 + $0x170] ss:$12 sps:$4 sm:$0xff]   ;;  %v2858_v55 = vld [vmem:[%s3257_s28 + $0x248] ss:$12 sps:$4 sm:$0xff]  }
  0xa8   : > { %1248 = vmatprep.subr.bf16.mxu1 %v2736_v53  ;;  %v2833_v53 = vld [vmem:[%s3257_s28 + $0xb0] ss:$12 sps:$4 sm:$0xff]  }
  0xaa   : > { %1977 = vmatpush1.bf16.msra.mxu0 %v2782_v58 }
  0xab   : > { %1249 = vmatpush1.bf16.msra.mxu1 %v2734_v56  ;;  %1978 = vmatprep.subr.bf16.mxu0 %v2787_v12 }
  0xac   : > { %1250 = vmatprep.subr.bf16.mxu1 %v2739_v57 }
  0xae   : > { %1979 = vmatpush1.bf16.msra.mxu0 %v2785_v14 }
  0xaf   : > { %1251 = vmatpush1.bf16.msra.mxu1 %v2737_v59  ;;  %1980 = vmatprep.subr.bf16.mxu0 %v2790_v16 }
  0xb0   : > { %1252 = vmatprep.subr.bf16.mxu1 %v2742_v60  ;;  %v622_v60 = vlaneseq }
  0xb2   : > { %1981 = vmatpush1.bf16.msra.mxu0 %v2788_v18 }
  0xb3   : > { %1253 = vmatpush1.bf16.msra.mxu1 %v2740_v61  ;;  %1982 = vmatprep.subr.bf16.mxu0 %v2793_v19  ;;  %v3423_v61 = vshrl.u32 %v622_v60, 7 }
  0xb4   : > { %1254 = vmatprep.subr.bf16.mxu1 %v2745_v62 }
  0xb5   : > { %v624_v62 = vsub.s32 0, %v3423_v61  ;;  %v632_v60 = vsub.s32 2, %v3423_v61 }
  0xb6   : > { %1983 = vmatpush1.bf16.msra.mxu0 %v2791_v20 }
  0xb7   : > { %1255 = vmatpush1.bf16.msra.mxu1 %v2743_v63  ;;  %1984 = vmatprep.subr.bf16.mxu0 %v2796_v22  ;;  %v3431_v63 = vld [vmem:[%s499_s16] sm:$0xf]  ;;  %v2862_v22 = vld [vmem:[%s3257_s28 + $0x188] ss:$12 sps:$4 sm:$0xff]  }
  0xb8   : > { %1267 = vmatprep.subr.bf16.mxu1 %v2748_v0  ;;  %v628_v0 = vsub.s32 1, %v3423_v61 }
  0xba   : > { %1257 = vmatmul.mubr.bf16.vlgmr.msra.gmra.mrb[4].mxu1 %v2719_v38  ;;  %1985 = vmatpush1.bf16.msra.mxu0 %v2794_v24  ;;  %v2816_v38 = vld [vmem:[%s3257_s28 + $0x124] ss:$12 sps:$4 sm:$0xff]   ;;  %v2863_v24 = vld [vmem:[%s3257_s28 + $0x260] ss:$12 sps:$4 sm:$0xff]  }
  0xbb   : > { %1268 = vmatpush1.bf16.msra.mxu1 %v2746_v1  ;;  %1299 = vmatprep.mubr.bf16.mxu1 %v2969_v35  ;;  %v2763_v35 = vld [vmem:[%s3259_s18 + $0x2ac] ss:$16 sps:$4 sm:$0xff]   ;;  %v625_v1 = vrot.slane %v3431_v63, %v624_v62 }
  0xbc   : > { %1269 = vmatprep.subr.bf16.mxu1 %v2751_v2  ;;  %1986 = vmatprep.subr.bf16.mxu0 %v2801_v26  ;;  %v629_v2 = vrot.slane %v3431_v63, %v628_v0  ;;  %v2867_v26 = vld [vmem:[%s3257_s28 + $0x1a0] ss:$12 sps:$4 sm:$0xff]  }
  0xbe   : > { %1987 = vmatpush1.bf16.msra.mxu0 %v2799_v28  ;;  %v2868_v28 = vld [vmem:[%s3257_s28 + $0x278] ss:$12 sps:$4 sm:$0xff]  }
  0xbf   : > { %1270 = vmatpush1.bf16.msra.mxu1 %v2749_v3  ;;  %1988 = vmatprep.subr.bf16.mxu0 %v2806_v30  ;;  %v2872_v30 = vld [vmem:[%s3257_s28 + $0x1b8] ss:$12 sps:$4 sm:$0xff]  }
  0xc0   : > { %1271 = vmatprep.subr.bf16.mxu1 %v2754_v5 }
  0xc2   : > { %1989 = vmatpush1.bf16.msra.mxu0 %v2804_v32  ;;  %v2873_v32 = vld [vmem:[%s3257_s28 + $0x290] ss:$12 sps:$4 sm:$0xff]  }
  0xc3   : > { %1272 = vmatpush1.bf16.msra.mxu1 %v2752_v6 }
  0xc4   : > { %1273 = vmatprep.subr.bf16.mxu1 %v2757_v7 }
  0xc7   : > { %1274 = vmatpush1.bf16.msra.mxu1 %v2755_v8 }
  0xc8   : > { %1275 = vmatprep.subr.bf16.mxu1 %v2760_v9 }
  0xcb   : > { %1276 = vmatpush1.bf16.msra.mxu1 %v2758_v10 }
  0xcc   : > { %1277 = vmatprep.subr.bf16.mxu1 %v2763_v35 }
  0xcf   : > { %1278 = vmatpush1.bf16.msra.mxu1 %v2761_v11 }
  0xd0   : > { %1279 = vmatprep.subr.bf16.mxu1 %v2766_v13 }
  0xd3   : > { %1280 = vmatpush1.bf16.msra.mxu1 %v2764_v15 }
  0xd4   : > { %1281 = vmatprep.subr.bf16.mxu1 %v2769_v17 }
  0xd7   : > { %1282 = vmatpush1.bf16.msra.mxu1 %v2767_v21  ;;  %v2834_v21 = vld [vmem:[%s3257_s28 + $0x180] ss:$12 sps:$4 sm:$0xff]  }
  0xd8   : > { %2504 = vmatprep.subr.bf16.mxu1 %v2797_v23  ;;  %v2839_v23 = vld [vmem:[%s3257_s28 + $0x19c] ss:$12 sps:$4 sm:$0xff]  }
  0xda   : > { %1300 = vmatmul.mubr.bf16.vlgmr.msra.gmra.mrb[4].mxu1 %v3300_v4  ;;  %v2811_v4 = vld [vmem:[%s3257_s28 + $0x10c] ss:$12 sps:$4 sm:$0xff]  }
  0xdb   : > { %2505 = vmatpush3.bf16.msra.mxu1 %v2798_v25  ;;  %1990 = vmatprep.subr.bf16.mxu0 %v2811_v4  ;;  %v2837_v25 = vld [vmem:[%s3257_s28 + $0x198] ss:$12 sps:$4 sm:$0xff]   ;;  %v2877_v4 = vld [vmem:[%s3257_s28 + $0x1d0] ss:$12 sps:$4 sm:$0xff]  }
  0xdc   : > { %2506 = vmatprep.subr.bf16.mxu1 %v2802_v27  ;;  %1991 = vmatpush1.bf16.msra.mxu0 %v2809_v36  ;;  %v2842_v27 = vld [vmem:[%s3257_s28 + $0x1b4] ss:$12 sps:$4 sm:$0xff]  }
  0xdd   : > { %1992 = vmatprep.subr.bf16.mxu0 %v2816_v38  ;;  %v2878_v36 = vld [vmem:[%s3257_s28 + $0x2a8] ss:$12 sps:$4 sm:$0xff]  }
  0xde   : > { %v2882_v38 = vld [vmem:[%s3257_s28 + $0x1e8] ss:$12 sps:$4 sm:$0xff]  }
  0xdf   : > { %2507 = vmatpush3.bf16.msra.mxu1 %v2803_v29  ;;  %v2840_v29 = vld [vmem:[%s3257_s28 + $0x1b0] ss:$12 sps:$4 sm:$0xff]  }
  0xe0   : > { %2508 = vmatprep.subr.bf16.mxu1 %v2807_v31  ;;  %1993 = vmatpush1.bf16.msra.mxu0 %v2814_v40  ;;  %v2845_v31 = vld [vmem:[%s3257_s28 + $0x1cc] ss:$12 sps:$4 sm:$0xff]  }
  0xe1   : > { %1994 = vmatprep.subr.bf16.mxu0 %v2821_v42  ;;  %v2883_v40 = vld [vmem:[%s3257_s28 + $0x2c0] ss:$12 sps:$4 sm:$0xff]  }
  0xe2   : > { %v2887_v42 = vld [vmem:[%s3257_s28 + $0x200] ss:$12 sps:$4 sm:$0xff]  }
  0xe3   : > { %2509 = vmatpush3.bf16.msra.mxu1 %v2808_v33  ;;  %v2843_v33 = vld [vmem:[%s3257_s28 + $0x1c8] ss:$12 sps:$4 sm:$0xff]  }
  0xe4   : > { %2510 = vmatprep.subr.bf16.mxu1 %v2812_v34  ;;  %1995 = vmatpush1.bf16.msra.mxu0 %v2819_v43  ;;  %v2848_v34 = vld [vmem:[%s3257_s28 + $0x1e4] ss:$12 sps:$4 sm:$0xff]   ;;  %v2854_v43 = vld [vmem:[%s3257_s28 + $0x214] ss:$12 sps:$4 sm:$0xff]  }
  0xe5   : > { %1996 = vmatprep.subr.bf16.mxu0 %v2826_v46  ;;  %v2892_v46 = vld [vmem:[%s3257_s28 + $0x218] ss:$12 sps:$4 sm:$0xff]  }
  0xe7   : > { %2511 = vmatpush3.bf16.msra.mxu1 %v2813_v37  ;;  %v2846_v37 = vld [vmem:[%s3257_s28 + $0x1e0] ss:$12 sps:$4 sm:$0xff]  }
  0xe8   : > { %2512 = vmatprep.subr.bf16.mxu1 %v2817_v39  ;;  %1997 = vmatpush1.bf16.msra.mxu0 %v2824_v47  ;;  %v2851_v39 = vld [vmem:[%s3257_s28 + $0x1fc] ss:$12 sps:$4 sm:$0xff]   ;;  %v2857_v47 = vld [vmem:[%s3257_s28 + $0x22c] ss:$12 sps:$4 sm:$0xff]  }
  0xe9   : > { %1998 = vmatprep.subr.bf16.mxu0 %v2831_v50  ;;  %v2897_v50 = vld [vmem:[%s3257_s28 + $0x230] ss:$12 sps:$4 sm:$0xff]  }
  0xeb   : > { %2513 = vmatpush3.bf16.msra.mxu1 %v2818_v41  ;;  %v2849_v41 = vld [vmem:[%s3257_s28 + $0x1f8] ss:$12 sps:$4 sm:$0xff]  }
  0xec   : > { %2514 = vmatprep.subr.bf16.mxu1 %v2822_v44  ;;  %1999 = vmatpush1.bf16.msra.mxu0 %v2829_v51  ;;  %v2888_v44 = vld [vmem:[%s3257_s28 + $0x2d8] ss:$12 sps:$4 sm:$0xff]  }
  0xed   : > { %2011 = vmatprep.subr.bf16.mxu0 %v2836_v54  ;;  %v2861_v51 = vld [vmem:[%s3257_s28 + $0x244] ss:$12 sps:$4 sm:$0xff]  }
  0xee   : > { %v2864_v54 = vld [vmem:[%s3257_s28 + $0x258] ss:$12 sps:$4 sm:$0xff]  }
  0xef   : > { %2515 = vmatpush3.bf16.msra.mxu1 %v2823_v45  ;;  %v2852_v45 = vld [vmem:[%s3257_s28 + $0x210] ss:$12 sps:$4 sm:$0xff]  }
  0xf0   : > { %2516 = vmatprep.subr.bf16.mxu1 %v2827_v48  ;;  %v2893_v48 = vld [vmem:[%s3257_s28 + $0x2f0] ss:$12 sps:$4 sm:$0xff]  }
  0xf3   : > { %2517 = vmatpush3.bf16.msra.mxu1 %v2828_v49  ;;  %v2855_v49 = vld [vmem:[%s3257_s28 + $0x228] ss:$12 sps:$4 sm:$0xff]  }
  0xf4   : > { %2518 = vmatprep.subr.bf16.mxu1 %v2832_v52  ;;  %v2859_v52 = vld [vmem:[%s3257_s28 + $0x240] ss:$12 sps:$4 sm:$0xff]  }
  0xf7   : > { %2519 = vmatpush3.bf16.msra.mxu1 %v2833_v53  ;;  %v2866_v53 = vld [vmem:[%s3257_s28 + $0x25c] ss:$12 sps:$4 sm:$0xff]  }
  0xf8   : > { %2526 = vmatprep.subr.bf16.mxu1 %v2858_v55  ;;  %v2871_v55 = vld [vmem:[%s3257_s28 + $0x274] ss:$12 sps:$4 sm:$0xff]  }
 0x14d   : > { %v1215_v56 = vpop.f32.mrb[0].mxu1 }
 0x14e   : > { %v1217_v57 = vpop.f32.mrb[1].mxu1 }
 0x14f   : > { %v1219_v58 = vpop.f32.mrb[2].mxu1 }
 0x150   : > { %v1221_v59 = vpop.f32.mrb[3].mxu1 }
 0x16c   : > { %v1172_v3 = vpop.f32.mrb[0].mxu0 }
 0x16d   : > { %v1173_v5 = vadd.f32 %v1172_v3, %v625_v1  ;;  %v1174_v6 = vpop.f32.mrb[1].mxu0  ;;  %v2886_v3 = vld [vmem:[%s3257_s28 + $0x2bc] ss:$12 sps:$4 sm:$0xff]  }
 0x16e   : > { %v1175_v7 = vadd.f32 %v1174_v6, %v629_v2  ;;  %v1176_v8 = vpop.f32.mrb[2].mxu0  ;;  %v2884_v6 = vld [vmem:[%s3257_s28 + $0x2b8] ss:$12 sps:$4 sm:$0xff]  }
 0x16f   : > { %v1216_v9 = vadd.f32 %v1215_v56, %v1173_v5  ;;  %v1177_v10 = vadd.f32 %v1176_v8, %v625_v1  ;;  %v1178_v35 = vpop.f32.mrb[3].mxu0  ;;  %v2869_v56 = vld [vmem:[%s3257_s28 + $0x270] ss:$12 sps:$4 sm:$0xff]   ;;  %v2879_v1 = vld [vmem:[%s3257_s28 + $0x2a0] ss:$12 sps:$4 sm:$0xff]   ;;  %v633_v5 = vrot.slane %v3431_v63, %v632_v60 }
 0x170   : > { %v1218_v11 = vadd.f32 %v1217_v57, %v1175_v7  ;;  %v1179_v12 = vadd.f32 %v1178_v35, %v629_v2  ;;  %v2876_v57 = vld [vmem:[%s3257_s28 + $0x28c] ss:$12 sps:$4 sm:$0xff]   ;;  %v636_v2 = vsub.s32 3, %v3423_v61  ;;  %v2891_v8 = vld [vmem:[%s3257_s28 + $0x2d4] ss:$12 sps:$4 sm:$0xff]  }
 0x171   : > { %v1220_v13 = vadd.f32 %v1219_v58, %v1177_v10  ;;  %v1310_v15 = vmax.f32 %v1216_v9, 0.0  ;;  %v2874_v58 = vld [vmem:[%s3257_s28 + $0x288] ss:$12 sps:$4 sm:$0xff]  }
 0x172   : > { %v1222_v14 = vadd.f32 %v1221_v59, %v1179_v12  ;;  %v1311_v17 = vmax.f32 %v1218_v11, 0.0  ;;  %v2881_v59 = vld [vmem:[%s3257_s28 + $0x2a4] ss:$12 sps:$4 sm:$0xff]   ;;  %v637_v7 = vrot.slane %v3431_v63, %v636_v2  ;;  %v2894_v63 = vld [vmem:[%s3257_s28 + $0x2e8] ss:$12 sps:$4 sm:$0xff]  }
 0x173   : > { %v1314_v16 = vmax.f32 %v1220_v13, 0.0  ;;  %v2889_v13 = vld [vmem:[%s3257_s28 + $0x2d0] ss:$12 sps:$4 sm:$0xff]  }
 0x174   : > { %v1315_v18 = vmax.f32 %v1222_v14, 0.0 }
 0x175   : > { %v1324_v19 = vpack.c.bf16 %v1314_v16, %v1310_v15  ;;  %v2896_v16 = vld [vmem:[%s3257_s28 + $0x2ec] ss:$12 sps:$4 sm:$0xff]  }
 0x176   : > { %v1325_v20 = vpack.c.bf16 %v1315_v18, %v1311_v17 }
 0x178   : > { %2000 = vmatprep.mubr.bf16.mxu0 %v1325_v20  ;;  %2086 = vmatprep.mubr.bf16.mxu1 %v1325_v20 }
 0x179   : > { %2001 = vmatmul.mubr.bf16.vlgmr.msra.gmra.mrb[4].mxu0 %v1324_v19  ;;  %2087 = vmatmul.mubr.bf16.vlgmr.msra.gmra.mrb[8].mxu1 %v1324_v19 }
 0x17a   : > { %2012 = vmatpush1.bf16.msra.mxu0 %v2834_v21  ;;  %2527 = vmatpush3.bf16.msra.mxu1 %v2862_v22 }
 0x17b   : > { %2013 = vmatprep.subr.bf16.mxu0 %v2839_v23  ;;  %2528 = vmatprep.subr.bf16.mxu1 %v2863_v24 }
 0x17e   : > { %2014 = vmatpush1.bf16.msra.mxu0 %v2837_v25  ;;  %2529 = vmatpush3.bf16.msra.mxu1 %v2867_v26 }
 0x17f   : > { %2015 = vmatprep.subr.bf16.mxu0 %v2842_v27  ;;  %2530 = vmatprep.subr.bf16.mxu1 %v2868_v28 }
 0x182   : > { %2016 = vmatpush1.bf16.msra.mxu0 %v2840_v29  ;;  %2531 = vmatpush3.bf16.msra.mxu1 %v2872_v30  ;;  %v1318_v30 = vld [vmem:[#allocation2] sm:$0xff] }
 0x183   : > { %2017 = vmatprep.subr.bf16.mxu0 %v2845_v31  ;;  %2532 = vmatprep.subr.bf16.mxu1 %v2873_v32  ;;  %v1319_v32 = vld [vmem:[#allocation2 + $0x8] sm:$0xff] }
 0x186   : > { %2018 = vmatpush1.bf16.msra.mxu0 %v2843_v33  ;;  %2533 = vmatpush3.bf16.msra.mxu1 %v2877_v4 }
 0x187   : > { %2019 = vmatprep.subr.bf16.mxu0 %v2848_v34  ;;  %2534 = vmatprep.subr.bf16.mxu1 %v2878_v36  ;;  %v1321_v34 = vld [vmem:[#allocation2 + $0x18] sm:$0xff] }
 0x18a   : > { %2020 = vmatpush1.bf16.msra.mxu0 %v2846_v37  ;;  %2535 = vmatpush3.bf16.msra.mxu1 %v2882_v38 }
 0x18b   : > { %2021 = vmatprep.subr.bf16.mxu0 %v2851_v39  ;;  %2536 = vmatprep.subr.bf16.mxu1 %v2883_v40  ;;  %v1322_v40 = vld [vmem:[#allocation2 + $0x20] sm:$0xff] }
 0x18e   : > { %2022 = vmatpush1.bf16.msra.mxu0 %v2849_v41  ;;  %2537 = vmatpush3.bf16.msra.mxu1 %v2887_v42  ;;  %v1320_v41 = vld [vmem:[#allocation2 + $0x10] sm:$0xff] }
 0x18f   : > { %2023 = vmatprep.subr.bf16.mxu0 %v2854_v43  ;;  %2538 = vmatprep.subr.bf16.mxu1 %v2888_v44 }
 0x192   : > { %2024 = vmatpush1.bf16.msra.mxu0 %v2852_v45  ;;  %2539 = vmatpush3.bf16.msra.mxu1 %v2892_v46 }
 0x193   : > { %2025 = vmatprep.subr.bf16.mxu0 %v2857_v47  ;;  %2540 = vmatprep.subr.bf16.mxu1 %v2893_v48 }
 0x196   : > { %2026 = vmatpush1.bf16.msra.mxu0 %v2855_v49  ;;  %2541 = vmatpush3.bf16.msra.mxu1 %v2897_v50  ;;  %v1323_v49 = vld [vmem:[#allocation2 + $0x28] sm:$0xff] }
 0x197   : > { %2027 = vmatprep.subr.bf16.mxu0 %v2861_v51 }
 0x19a   : > { %2028 = vmatpush1.bf16.msra.mxu0 %v2859_v52 }
 0x19b   : > { %2029 = vmatprep.subr.bf16.mxu0 %v2866_v53 }
 0x19e   : > { %2030 = vmatpush1.bf16.msra.mxu0 %v2864_v54 }
 0x19f   : > { %2031 = vmatprep.subr.bf16.mxu0 %v2871_v55  ;;  %v2158_v55 = vld [vmem:[%s3549_s4] sm:$0x7] (!%p2498_p12) }
 0x1a2   : > { %2032 = vmatpush1.bf16.msra.mxu0 %v2869_v56 }
 0x1a3   : > { %2033 = vmatprep.subr.bf16.mxu0 %v2876_v57  ;;  %v2163_v57 = vrot.slane (!%p2498_p12), %v2158_v55, %v624_v62 }
 0x1a6   : > { %2034 = vmatpush1.bf16.msra.mxu0 %v2874_v58  ;;  %v2167_v58 = vrot.slane (!%p2498_p12), %v2158_v55, %v628_v0 }
 0x1a7   : > { %2035 = vmatprep.subr.bf16.mxu0 %v2881_v59 }
 0x1aa   : > { %2036 = vmatpush1.bf16.msra.mxu0 %v2879_v1  ;;  %v2171_v1 = vrot.slane (!%p2498_p12), %v2158_v55, %v632_v60 }
 0x1ab   : > { %2037 = vmatprep.subr.bf16.mxu0 %v2886_v3 }
 0x1ad   : > { %v1301_v9 = vpop.f32.mrb[4].mxu1 }
 0x1ae   : > { %v2556_v10 = vadd.f32 %v1301_v9, %v633_v5  ;;  %v1303_v35 = vpop.f32.mrb[5].mxu1  ;;  %2038 = vmatpush1.bf16.msra.mxu0 %v2884_v6 }
 0x1af   : > { %v2557_v11 = vadd.f32 %v1303_v35, %v637_v7  ;;  %v1305_v12 = vpop.f32.mrb[6].mxu1  ;;  %2039 = vmatprep.subr.bf16.mxu0 %v2891_v8 }
 0x1b0   : > { %v2558_v14 = vadd.f32 %v1305_v12, %v633_v5  ;;  %v1307_v15 = vpop.f32.mrb[7].mxu1  ;;  %v1312_v18 = vmax.f32 %v2556_v10, 0.0 }
 0x1b1   : > { %v2559_v17 = vadd.f32 %v1307_v15, %v637_v7  ;;  %v1313_v20 = vmax.f32 %v2557_v11, 0.0 }
 0x1b2   : > { %v1316_v19 = vmax.f32 %v2558_v14, 0.0  ;;  %2040 = vmatpush1.bf16.msra.mxu0 %v2889_v13 }
 0x1b3   : > { %v1317_v21 = vmax.f32 %v2559_v17, 0.0  ;;  %2041 = vmatprep.subr.bf16.mxu0 %v2896_v16 }
 0x1b4   : > { %v1326_v22 = vpack.c.bf16 %v1316_v19, %v1312_v18 }
 0x1b5   : > { %v1327_v23 = vpack.c.bf16 %v1317_v21, %v1313_v20 }
 0x1b6   : > { %2042 = vmatpush1.bf16.msra.mxu0 %v2894_v63 }
 0x1b7   : > { %2043 = vmatprep.mubr.bf16.mxu0 %v1327_v23  ;;  %2127 = vmatprep.mubr.bf16.mxu1 %v1327_v23 }
 0x1b8   : > { %2128 = vmatmul.mubr.bf16.vlgmr.msra.gmra.mrb[12].mxu1 %v1326_v22 }
 0x1b9   : > { %2044 = vmatmul.mubr.bf16.vlgmr.msra.gmra.mrb[4].mxu0 %v1326_v22 }
 0x24c   : > { %v2520_v24 = vpop.f32.mrb[8].mxu1 }
 0x24d   : > { %v2521_v25 = vpop.f32.mrb[9].mxu1 }
 0x24e   : > { %v2522_v26 = vadd.f32 %v2521_v25, %v2520_v24  ;;  %v2523_v27 = vpop.f32.mrb[10].mxu1 }
 0x24f   : > { %v2524_v28 = vpop.f32.mrb[11].mxu1 }
 0x250   : > { %v2525_v29 = vadd.f32 %v2524_v28, %v2523_v27 }
 0x28b   : > { %v2542_v31 = vpop.f32.mrb[12].mxu1 }
 0x28c   : > { %v2045_v33 = vpop.f32.mrb[4].mxu0  ;;  %v2543_v4 = vpop.f32.mrb[13].mxu1 }
 0x28d   : > { %v2136_v36 = vadd.f32 %v2045_v33, %v1318_v30  ;;  %v2544_v37 = vadd.f32 %v2543_v4, %v2542_v31  ;;  %v2047_v38 = vpop.f32.mrb[5].mxu0  ;;  %v2545_v39 = vpop.f32.mrb[14].mxu1 }
 0x28e   : > { %v2137_v42 = vadd.f32 %v2047_v38, %v1319_v32  ;;  %v2049_v43 = vpop.f32.mrb[6].mxu0  ;;  %v2546_v44 = vpop.f32.mrb[15].mxu1 }
 0x28f   : > { %2142 = vst [vmem:[#allocation2] sm:$0xff] %v2136_v36  ;;  %v2130_v45 = vadd.f32 %v2544_v37, %v2522_v26  ;;  %v2139_v46 = vadd.f32 %v2049_v43, %v1321_v34  ;;  %v2547_v47 = vadd.f32 %v2546_v44, %v2545_v39  ;;  %v2051_v48 = vpop.f32.mrb[7].mxu0  ;;  %2151 = sbr.rel (%p2498_p12) target bundleno = 672 (0x2a0), region = 71 }
 0x290   : > { %2143 = vst [vmem:[#allocation2 + $0x8] sm:$0xff] %v2137_v42  ;;  %v2140_v50 = vadd.f32 %v2051_v48, %v1322_v40 }
 0x291   : > { %v2138_v51 = vadd.f32 %v2130_v45, %v1320_v41  ;;  %2145 = vst [vmem:[#allocation2 + $0x18] sm:$0xff] %v2139_v46  ;;  %v2133_v52 = vadd.f32 %v2547_v47, %v2525_v29 }
 0x292   : > { %2146 = vst [vmem:[#allocation2 + $0x20] sm:$0xff] %v2140_v50 }
 0x293   : > { %2144 = vst [vmem:[#allocation2 + $0x10] sm:$0xff] %v2138_v51  ;;  %v2141_v53 = vadd.f32 %v2133_v52, %v1323_v49 }
 0x295   : > { %2147 = vst [vmem:[#allocation2 + $0x28] sm:$0xff] %v2141_v53 }
 0x296   : > { %v2152_v54 = vld [vmem:[#allocation2] sm:$0xff] }
 0x297   : > { %v2153_v56 = vld [vmem:[#allocation2 + $0x8] sm:$0xff]  ;;  %v2175_v6 = vadd.f32 %v2163_v57, %v2152_v54 }
 0x298   : > { %v2155_v2 = vld [vmem:[#allocation2 + $0x18] sm:$0xff]  ;;  %v2176_v7 = vadd.f32 %v2167_v58, %v2153_v56 }
 0x299   : > { %v2156_v3 = vld [vmem:[#allocation2 + $0x20] sm:$0xff]  ;;  %v2178_v9 = vadd.f32 %v2163_v57, %v2155_v2  ;;  %2181 = vst [vmem:[#allocation4] sm:$0xff] %v2175_v6 }
 0x29a   : > { %v2154_v59 = vld [vmem:[#allocation2 + $0x10] sm:$0xff]  ;;  %v2179_v10 = vadd.f32 %v2167_v58, %v2156_v3  ;;  %2182 = vst [vmem:[#allocation4 + $0x8] sm:$0xff] %v2176_v7 }
 0x29b   : > { %v2177_v8 = vadd.f32 %v2171_v1, %v2154_v59  ;;  %2184 = vst [vmem:[#allocation4 + $0x18] sm:$0xff] %v2178_v9 }
 0x29c   : > { %v2157_v5 = vld [vmem:[#allocation2 + $0x28] sm:$0xff]  ;;  %2185 = vst [vmem:[#allocation4 + $0x20] sm:$0xff] %v2179_v10 }
 0x29d   : > { %v2180_v35 = vadd.f32 %v2171_v1, %v2157_v5  ;;  %2183 = vst [vmem:[#allocation4 + $0x10] sm:$0xff] %v2177_v8 }
 0x29f   : > { %2186 = vst [vmem:[#allocation4 + $0x28] sm:$0xff] %v2180_v35 }
 0x2a0 PF: > { %p3504_p13 = scmp.eq.s32.totalorder %s2292_s23, 2  ;;  %s2970_s14 = smov [#allocation4]  }
 0x2a1   : > { %s2197_s15 = sshll.u32 %s2970_s14, 4  ;;  %s2198_s15 = int_to_ptr.vmem [resolvable:$true] %s2197_s15 }
 0x2a2   : > { %s2898_s16 = scalar_lea.vmem %s2198_s15, 768  ;;  %p2905_p3 = scmp.lt.s32.totalorder %s2198_s15, %s2198_s15 }
 0x2a3   : > { %p2899_p0 = scmp.ne.s32.totalorder %s2198_s15, %s2898_s16  ;;  %p2906_p4 = scmp.lt.s32.totalorder %s2898_s16, %s2898_s16 }
 0x2a5   : > { %p2900_p1 = pnand %p2899_p0, %p3504_p13  ;;  %p2907_p5 = por %p2906_p4, %p2905_p3 }
 0x2a7   : > { %p2901_p2 = pneg %p2900_p1 }
 0x2a9   : > { %p2908_p6 = pnand %p2907_p5, %p2901_p2 }
 0x2ab   : > { %2911 = shalt.err (!%p2908_p6)
}
 0x2ac   : > { %s2912_s23 = scalar_lea.hbm %s3550_s5, 768 }
 0x2ad   : > { %p2913_p7 = scmp.ne.s32.totalorder %s3550_s5, %s2912_s23  ;;  %p2918_p10 = scmp.lt.u32.totalorder %s2912_s23, %s3550_s5 }
 0x2af   : > { %p2914_p8 = pnand %p2913_p7, %p3504_p13 }
 0x2b1   : > { %p2915_p9 = pneg %p2914_p8 }
 0x2b3   : > { %p2920_p11 = pnand %p2918_p10, %p2915_p9 }
 0x2b5   : > { %2923 = shalt.err (!%p2920_p11)
}
 0x2b6   : > { %s2971_s30 = smov 384   ;;  %s2972_s6 = smov 24  }
 0x2b7   : > { %2572 = dma.vmem_to_hbm [thread:$0]  (%p3504_p13), %s2198_s15, 768, %s3550_s5, [#allocation5], %s2971_s30, %s2971_s30, %s2972_s6  }
 0x2b8   : > { %2945 = dma.done.wait (%p3504_p13), [#allocation5], 768  }
 0x2b9   : > { %2947 = vsyncadd (%p3504_p13), [#allocation5], 4294966528 }
 0x2ba PF: > { %s16_s22 = sadd.s32 1, %s2966_s22   ;;  %s3552_s18 = smov %s2954_s19 }
 0x2bb   : > { %p13_p12 = scmp.ge.s32.totalorder %s16_s22, 5   ;;  %s3553_s19 = smov %s3039_s27 }
 0x2bc   : > { %s3554_s20 = smov %s2962_s21  ;;  %s3555_s21 = smov %s3557_s24 }
 0x2bd   :  { %15 = sbr.rel (!%p13_p12) target bundleno = 3 (0x3), region = 113 }
 0x2c4   :  { %2213 = vsyncpa [#allocation5], 1 }
 0x2c5   :  { %2215 = vsyncpa [#allocation5 + $0x1], 1 }

</bundles_post_ra>
